<compile_context>
chip_gen: v7x
topology: tpu7x:2x2x1
jax: 0.10.0
libtpu: 0.0.40
codegen_flags: <defaults>
</compile_context>

<pallas_src>
from functools import partial

import numpy as np
import jax
import jax.numpy as jnp
from jax.experimental import pallas as pl
from jax.experimental.pallas import tpu as pltpu

# ---------------- config (small synthetic sizes) ----------------
LAT_C = 4        # unet.config.in_channels
LAT_HW = 16      # latent spatial size (stand-in for 64)
SEQ = 8          # text sequence length (stand-in for 77)
DIM = 32         # text hidden size (stand-in for 768)
VOCAB = 64
IMG_C = 3
T_EMB = 32       # timestep embedding size
HW = LAT_HW * LAT_HW          # flattened spatial (lane dim) = 256
assert HW % 128 == 0, "latent H*W must be a multiple of 128 for the lane-dense layout"

# 3x3 conv taps: (dy, dx) offsets -> roll shifts (jnp.roll convention) and
# zero-padding validity masks over the flattened p = h*W + w axis.
_TAPS = [(dy, dx) for dy in (-1, 0, 1) for dx in (-1, 0, 1)]
_SHIFTS = [(-(dy * LAT_HW + dx)) % HW for dy, dx in _TAPS]


def _make_tap_masks():
    h = np.arange(LAT_HW)[:, None]
    w = np.arange(LAT_HW)[None, :]
    masks = []
    for dy, dx in _TAPS:
        valid = ((h + dy >= 0) & (h + dy < LAT_HW) &
                 (w + dx >= 0) & (w + dx < LAT_HW)).astype(np.float32)
        masks.append(valid.reshape(1, HW))
    return np.stack(masks, axis=0)           # (9, 1, HW)


_TAP_MASKS = jnp.asarray(_make_tap_masks())


# ---------------- the single fused Pallas kernel ----------------

def _generator_kernel(coef_ref,            # SMEM (S, 8) per-step scalars (+ guidance)
                      ht_ref,              # (DIM, 2*SEQ) token features [uncond|cond]
                      wenc_ref, benc_ref,  # (DIM, DIM), (DIM, 1)   text-encoder proj
                      wctx_ref,            # (LAT_C, DIM)           context proj
                      wconv_ref,           # (9, LAT_C, LAT_C)      3x3 conv taps
                      mask_ref,            # (9, 1, HW)             zero-padding masks
                      tbias_ref,           # (S, LAT_C, 1)          timestep FiLM bias
                      wdec_ref, bdec_ref,  # (IMG_C, LAT_C), (IMG_C, 1)  VAE 1x1 decode
                      lat0_ref,            # (LAT_C, HW)            initial noise latent
                      img_ref):            # out (IMG_C, HW)
    f32 = jnp.float32
    bf16 = jnp.bfloat16
    num_steps = tbias_ref.shape[0]          # static

    # ---- text-encoder stand-in (runs once): proj -> ctx proj -> mean pool ----
    embt = jnp.dot(wenc_ref[...].astype(bf16), ht_ref[...].astype(bf16),
                   preferred_element_type=f32) + benc_ref[...]           # (DIM, 2*SEQ)
    ctx_all = jnp.dot(wctx_ref[...].astype(bf16), embt.astype(bf16),
                      preferred_element_type=f32)                        # (LAT_C, 2*SEQ)
    ctx_u = jnp.mean(ctx_all[:, 0:SEQ], axis=1, keepdims=True)           # (LAT_C, 1)
    ctx_t = jnp.mean(ctx_all[:, SEQ:2 * SEQ], axis=1, keepdims=True)     # (LAT_C, 1)

    g = coef_ref[0, 4]                                                   # guidance scale

    # hoist small constants out of the step loop
    wk = [wconv_ref[k].astype(bf16) for k in range(9)]                   # 9 x (C, C)
    mk = [mask_ref[k] for k in range(9)]                                 # 9 x (1, HW)

    lat = lat0_ref[...]                                                  # (C, HW) resident

    # fully unrolled denoising loop (num_steps is a small static count)
    for s in range(num_steps):
        # synthetic UNet: zero-padded 3x3 conv via 9 rolled+masked taps.
        # The conv is computed ONCE; only the FiLM epilogues differ for CFG.
        conv = jnp.zeros((LAT_C, HW), f32)
        for k, shift in enumerate(_SHIFTS):
            sh = lat if shift == 0 else pltpu.roll(lat, shift=shift, axis=1)
            sh = sh * mk[k]
            conv = conv + jnp.dot(wk[k], sh.astype(bf16),
                                  preferred_element_type=f32)
        tb = tbias_ref[s]                                # (C, 1) timestep FiLM bias
        eps_u = conv * (1.0 + ctx_u) + tb                # unconditional branch
        eps_t = conv * (1.0 + ctx_t) + tb                # text-conditioned branch
        eps = eps_u + g * (eps_t - eps_u)                # classifier-free guidance

        inv_sqrt_at = coef_ref[s, 0]
        sqrt_1m_at = coef_ref[s, 1]
        sqrt_ap = coef_ref[s, 2]
        sqrt_1m_ap = coef_ref[s, 3]
        x0 = (lat - sqrt_1m_at * eps) * inv_sqrt_at      # DDIM (eta=0) step
        lat = sqrt_ap * x0 + sqrt_1m_ap * eps

    # ---- VAE decode stand-in (fused epilogue): scale, 1x1 conv, /2+0.5, clamp ----
    latv = lat * f32(1.0 / 0.18215)
    img = jnp.dot(wdec_ref[...].astype(bf16), latv.astype(bf16),
                  preferred_element_type=f32) + bdec_ref[...]            # (IMG_C, HW)
    img_ref[...] = jnp.clip(img * 0.5 + 0.5, 0.0, 1.0)


def _run_generator(coefs, ht, wenc, benc, wctx, wconv, masks, tbias, wdec, bdec, lat0):
    num_steps = coefs.shape[0]

    def full(shape):
        return pl.BlockSpec(shape, lambda i, s=shape: (0,) * len(s))

    return pl.pallas_call(
        _generator_kernel,
        out_shape=jax.ShapeDtypeStruct((IMG_C, HW), jnp.float32),
        grid=(1,),
        in_specs=[
            pl.BlockSpec(memory_space=pltpu.MemorySpace.SMEM),   # per-step scalar table
            full((DIM, 2 * SEQ)),
            full((DIM, DIM)),
            full((DIM, 1)),
            full((LAT_C, DIM)),
            full((9, LAT_C, LAT_C)),
            full((9, 1, HW)),
            full((num_steps, LAT_C, 1)),
            full((IMG_C, LAT_C)),
            full((IMG_C, 1)),
            full((LAT_C, HW)),
        ],
        out_specs=full((IMG_C, HW)),
        compiler_params=pltpu.CompilerParams(
            dimension_semantics=("arbitrary",)),
    )(coefs, ht, wenc, benc, wctx, wconv, masks, tbias, wdec, bdec, lat0)


# ---------------- synthetic parameters ----------------

def init_params(key):
    ks = jax.random.split(key, 8)
    s = 0.05
    return {
        'embed': jax.random.normal(ks[0], (VOCAB, DIM), jnp.float32) * s,
        'pos': jax.random.normal(ks[1], (SEQ, DIM), jnp.float32) * s,
        'W_encT': jax.random.normal(ks[2], (DIM, DIM), jnp.float32) * s,   # acts on (DIM, tokens)
        'b_enc': jnp.zeros((DIM, 1), jnp.float32),
        'W_conv': jax.random.normal(ks[3], (9, LAT_C, LAT_C), jnp.float32) * s,
        'W_ctxT': jax.random.normal(ks[4], (LAT_C, DIM), jnp.float32) * s,
        't_freqs': jnp.exp(-jnp.arange(T_EMB // 2, dtype=jnp.float32)
                           * (np.log(10000.0) / (T_EMB // 2))),
        'W_t': jax.random.normal(ks[5], (T_EMB, LAT_C), jnp.float32) * s,
        'W_decT': jax.random.normal(ks[6], (IMG_C, LAT_C), jnp.float32) * s,
        'b_dec': jnp.zeros((IMG_C, 1), jnp.float32),
    }


def ddim_schedule(num_train=1000, num_inference_steps=5, steps_offset=1):
    # scaled_linear betas like the SD-v1-4 scheduler config (trace-time numpy)
    betas = np.linspace(0.00085 ** 0.5, 0.012 ** 0.5, num_train, dtype=np.float64) ** 2
    alphas_cumprod = np.cumprod(1.0 - betas)
    step_ratio = num_train // num_inference_steps
    timesteps = (np.arange(num_inference_steps) * step_ratio).round()[::-1].astype(np.int64)
    timesteps = timesteps + steps_offset
    return alphas_cumprod, timesteps, step_ratio


# ---------------- forward (mirrors ImageGenerator.forward) ----------------

@partial(jax.jit, static_argnames=("num_inference_steps", "guidance_scale"))
def forward(params, token_ids, key, num_inference_steps=5, guidance_scale=7.5):
    # TODO(synk): CLIPTokenizer + CLIP embedding gather kept as trace-time JAX glue.
    uncond_ids = jnp.zeros((SEQ,), jnp.int32)
    h_uncond = params['embed'][uncond_ids] + params['pos']        # (SEQ, DIM)
    h_cond = params['embed'][token_ids] + params['pos']           # (SEQ, DIM)
    ht = jnp.concatenate([h_uncond, h_cond], axis=0).T            # (DIM, 2*SEQ), [uncond|cond]

    # DDIM schedule -> per-step scalar table for SMEM (single compiled kernel,
    # no per-step baked constants / retracing).
    ac, timesteps, step_ratio = ddim_schedule(1000, num_inference_steps)
    coefs_np = np.zeros((num_inference_steps, 8), np.float32)
    for s, t in enumerate(timesteps):
        t = int(t)
        prev_t = t - step_ratio
        a_t = float(ac[t])
        a_prev = float(ac[prev_t]) if prev_t >= 0 else float(ac[0])
        coefs_np[s, 0] = 1.0 / np.sqrt(a_t)
        coefs_np[s, 1] = np.sqrt(1.0 - a_t)
        coefs_np[s, 2] = np.sqrt(a_prev)
        coefs_np[s, 3] = np.sqrt(1.0 - a_prev)
    coefs_np[0, 4] = guidance_scale
    coefs = jnp.asarray(coefs_np)

    # per-step sinusoidal timestep embedding -> FiLM bias table (S, C, 1) (glue, once)
    targ = jnp.asarray(timesteps, jnp.float32)[:, None] * params['t_freqs'][None, :]
    t_emb = jnp.concatenate([jnp.sin(targ), jnp.cos(targ)], axis=1)   # (S, T_EMB)
    tbias = (t_emb @ params['W_t'])[:, :, None]                       # (S, LAT_C, 1)

    # initial latent noise; reshape NCHW -> lane-dense (C, H*W) (pure reshape)
    lat0 = jax.random.normal(key, (1, LAT_C, LAT_HW, LAT_HW), jnp.float32)
    lat0 = lat0.reshape(LAT_C, HW)

    img = _run_generator(coefs, ht, params['W_encT'], params['b_enc'],
                         params['W_ctxT'], params['W_conv'], _TAP_MASKS, tbias,
                         params['W_decT'], params['b_dec'], lat0)
    return img.reshape(1, IMG_C, LAT_HW, LAT_HW)


if __name__ == "__main__":
    key = jax.random.PRNGKey(0)
    pkey, lkey = jax.random.split(key)
    params = init_params(pkey)
    # TODO(synk): tokenizer replaced by deterministic synthetic token ids for the prompt.
    token_ids = (jnp.arange(SEQ, dtype=jnp.int32) * 7 + 3) % VOCAB
    image = forward(params, token_ids, lkey, num_inference_steps=5, guidance_scale=7.5)
    image = jax.block_until_ready(image)
    assert image.shape == (1, IMG_C, LAT_HW, LAT_HW), image.shape
    assert bool(jnp.isfinite(image).all())
    print("KERNEL_OK")
</pallas_src>

<mosaic_0001>
module attributes {stable_mosaic.version = 11 : i64} {
  func.func @_generator_kernel(%arg0: i32, %arg1: memref<5x8xf32, #tpu.memory_space<smem>>, %arg2: memref<32x16xf32, #tpu.memory_space<vmem>>, %arg3: memref<32x32xf32, #tpu.memory_space<vmem>>, %arg4: memref<32x1xf32, #tpu.memory_space<vmem>>, %arg5: memref<4x32xf32, #tpu.memory_space<vmem>>, %arg6: memref<9x4x4xf32, #tpu.memory_space<vmem>>, %arg7: memref<9x1x256xf32, #tpu.memory_space<vmem>>, %arg8: memref<5x4x1xf32, #tpu.memory_space<vmem>>, %arg9: memref<3x4xf32, #tpu.memory_space<vmem>>, %arg10: memref<3x1xf32, #tpu.memory_space<vmem>>, %arg11: memref<4x256xf32, #tpu.memory_space<vmem>>, %arg12: memref<3x256xf32, #tpu.memory_space<vmem>>) attributes {dimension_semantics = [#tpu.dimension_semantics<arbitrary>], iteration_bounds = array<i64: 1>, scalar_prefetch = 0 : i64, scratch_operands = 0 : i64, tpu.core_type = #tpu.core_type<tc>, window_params = [{transform_indices = @transform_0, window_bounds = array<i64: 5, 8>}, {pipeline_mode = #tpu.pipeline_mode<synchronous>, transform_indices = @transform_1, window_bounds = array<i64: 32, 16>}, {pipeline_mode = #tpu.pipeline_mode<synchronous>, transform_indices = @transform_2, window_bounds = array<i64: 32, 32>}, {pipeline_mode = #tpu.pipeline_mode<synchronous>, transform_indices = @transform_3, window_bounds = array<i64: 32, 1>}, {pipeline_mode = #tpu.pipeline_mode<synchronous>, transform_indices = @transform_4, window_bounds = array<i64: 4, 32>}, {pipeline_mode = #tpu.pipeline_mode<synchronous>, transform_indices = @transform_5, window_bounds = array<i64: 9, 4, 4>}, {pipeline_mode = #tpu.pipeline_mode<synchronous>, transform_indices = @transform_6, window_bounds = array<i64: 9, 1, 256>}, {pipeline_mode = #tpu.pipeline_mode<synchronous>, transform_indices = @transform_7, window_bounds = array<i64: 5, 4, 1>}, {pipeline_mode = #tpu.pipeline_mode<synchronous>, transform_indices = @transform_8, window_bounds = array<i64: 3, 4>}, {pipeline_mode = #tpu.pipeline_mode<synchronous>, transform_indices = @transform_9, window_bounds = array<i64: 3, 1>}, {pipeline_mode = #tpu.pipeline_mode<synchronous>, transform_indices = @transform_10, window_bounds = array<i64: 4, 256>}, {pipeline_mode = #tpu.pipeline_mode<synchronous>, transform_indices = @transform_11, window_bounds = array<i64: 3, 256>}]} {
    %c0 = arith.constant 0 : index
    %c0_0 = arith.constant 0 : index
    %0 = vector.load %arg3[%c0, %c0_0] : memref<32x32xf32, #tpu.memory_space<vmem>>, vector<32x32xf32>
    %1 = arith.truncf %0 : vector<32x32xf32> to vector<32x32xbf16>
    %c0_1 = arith.constant 0 : index
    %c0_2 = arith.constant 0 : index
    %2 = vector.load %arg2[%c0_1, %c0_2] : memref<32x16xf32, #tpu.memory_space<vmem>>, vector<32x16xf32>
    %3 = arith.truncf %2 : vector<32x16xf32> to vector<32x16xbf16>
    %cst = arith.constant dense<0.000000e+00> : vector<32x16xf32>
    %4 = tpu.matmul %1, %3, %cst {dimension_numbers = #tpu.dot_dimension_numbers<[1], [0], [0], [1], [0, 0, 1, 1], [], []>} : vector<32x32xbf16>, vector<32x16xbf16>, vector<32x16xf32> -> vector<32x16xf32>
    %c0_3 = arith.constant 0 : index
    %c0_4 = arith.constant 0 : index
    %5 = vector.load %arg4[%c0_3, %c0_4] : memref<32x1xf32, #tpu.memory_space<vmem>>, vector<32x1xf32>
    %6 = vector.broadcast %5 : vector<32x1xf32> to vector<32x16xf32>
    %7 = arith.addf %4, %6 : vector<32x16xf32>
    %c0_5 = arith.constant 0 : index
    %c0_6 = arith.constant 0 : index
    %8 = vector.load %arg5[%c0_5, %c0_6] : memref<4x32xf32, #tpu.memory_space<vmem>>, vector<4x32xf32>
    %9 = arith.truncf %8 : vector<4x32xf32> to vector<4x32xbf16>
    %10 = arith.truncf %7 : vector<32x16xf32> to vector<32x16xbf16>
    %cst_7 = arith.constant dense<0.000000e+00> : vector<4x16xf32>
    %11 = tpu.matmul %9, %10, %cst_7 {dimension_numbers = #tpu.dot_dimension_numbers<[1], [0], [0], [1], [0, 0, 1, 1], [], []>} : vector<4x32xbf16>, vector<32x16xbf16>, vector<4x16xf32> -> vector<4x16xf32>
    %12 = vector.extract_strided_slice %11 {offsets = [0, 0], sizes = [4, 8], strides = [1, 1]} : vector<4x16xf32> to vector<4x8xf32>
    %cst_8 = arith.constant dense<0.000000e+00> : vector<4xf32>
    %13 = vector.multi_reduction <add>, %12, %cst_8 [1] : vector<4x8xf32> to vector<4xf32>
    %14 = vector.shape_cast %13 : vector<4xf32> to vector<4x1xf32>
    %cst_9 = arith.constant 8.000000e+00 : f32
    %15 = vector.broadcast %cst_9 : f32 to vector<4x1xf32>
    %16 = arith.divf %14, %15 : vector<4x1xf32>
    %17 = vector.extract_strided_slice %11 {offsets = [0, 8], sizes = [4, 8], strides = [1, 1]} : vector<4x16xf32> to vector<4x8xf32>
    %cst_10 = arith.constant dense<0.000000e+00> : vector<4xf32>
    %18 = vector.multi_reduction <add>, %17, %cst_10 [1] : vector<4x8xf32> to vector<4xf32>
    %19 = vector.shape_cast %18 : vector<4xf32> to vector<4x1xf32>
    %cst_11 = arith.constant 8.000000e+00 : f32
    %20 = vector.broadcast %cst_11 : f32 to vector<4x1xf32>
    %21 = arith.divf %19, %20 : vector<4x1xf32>
    %c0_12 = arith.constant 0 : index
    %c4 = arith.constant 4 : index
    %22 = memref.load %arg1[%c0_12, %c4] : memref<5x8xf32, #tpu.memory_space<smem>>
    %c0_13 = arith.constant 0 : index
    %c0_14 = arith.constant 0 : index
    %c0_15 = arith.constant 0 : index
    %23 = vector.load %arg6[%c0_13, %c0_14, %c0_15] : memref<9x4x4xf32, #tpu.memory_space<vmem>>, vector<1x4x4xf32>
    %24 = vector.shape_cast %23 : vector<1x4x4xf32> to vector<4x4xf32>
    %25 = arith.truncf %24 : vector<4x4xf32> to vector<4x4xbf16>
    %c1 = arith.constant 1 : index
    %c0_16 = arith.constant 0 : index
    %c0_17 = arith.constant 0 : index
    %26 = vector.load %arg6[%c1, %c0_16, %c0_17] : memref<9x4x4xf32, #tpu.memory_space<vmem>>, vector<1x4x4xf32>
    %27 = vector.shape_cast %26 : vector<1x4x4xf32> to vector<4x4xf32>
    %28 = arith.truncf %27 : vector<4x4xf32> to vector<4x4xbf16>
    %c2 = arith.constant 2 : index
    %c0_18 = arith.constant 0 : index
    %c0_19 = arith.constant 0 : index
    %29 = vector.load %arg6[%c2, %c0_18, %c0_19] : memref<9x4x4xf32, #tpu.memory_space<vmem>>, vector<1x4x4xf32>
    %30 = vector.shape_cast %29 : vector<1x4x4xf32> to vector<4x4xf32>
    %31 = arith.truncf %30 : vector<4x4xf32> to vector<4x4xbf16>
    %c3 = arith.constant 3 : index
    %c0_20 = arith.constant 0 : index
    %c0_21 = arith.constant 0 : index
    %32 = vector.load %arg6[%c3, %c0_20, %c0_21] : memref<9x4x4xf32, #tpu.memory_space<vmem>>, vector<1x4x4xf32>
    %33 = vector.shape_cast %32 : vector<1x4x4xf32> to vector<4x4xf32>
    %34 = arith.truncf %33 : vector<4x4xf32> to vector<4x4xbf16>
    %c4_22 = arith.constant 4 : index
    %c0_23 = arith.constant 0 : index
    %c0_24 = arith.constant 0 : index
    %35 = vector.load %arg6[%c4_22, %c0_23, %c0_24] : memref<9x4x4xf32, #tpu.memory_space<vmem>>, vector<1x4x4xf32>
    %36 = vector.shape_cast %35 : vector<1x4x4xf32> to vector<4x4xf32>
    %37 = arith.truncf %36 : vector<4x4xf32> to vector<4x4xbf16>
    %c5 = arith.constant 5 : index
    %c0_25 = arith.constant 0 : index
    %c0_26 = arith.constant 0 : index
    %38 = vector.load %arg6[%c5, %c0_25, %c0_26] : memref<9x4x4xf32, #tpu.memory_space<vmem>>, vector<1x4x4xf32>
    %39 = vector.shape_cast %38 : vector<1x4x4xf32> to vector<4x4xf32>
    %40 = arith.truncf %39 : vector<4x4xf32> to vector<4x4xbf16>
    %c6 = arith.constant 6 : index
    %c0_27 = arith.constant 0 : index
    %c0_28 = arith.constant 0 : index
    %41 = vector.load %arg6[%c6, %c0_27, %c0_28] : memref<9x4x4xf32, #tpu.memory_space<vmem>>, vector<1x4x4xf32>
    %42 = vector.shape_cast %41 : vector<1x4x4xf32> to vector<4x4xf32>
    %43 = arith.truncf %42 : vector<4x4xf32> to vector<4x4xbf16>
    %c7 = arith.constant 7 : index
    %c0_29 = arith.constant 0 : index
    %c0_30 = arith.constant 0 : index
    %44 = vector.load %arg6[%c7, %c0_29, %c0_30] : memref<9x4x4xf32, #tpu.memory_space<vmem>>, vector<1x4x4xf32>
    %45 = vector.shape_cast %44 : vector<1x4x4xf32> to vector<4x4xf32>
    %46 = arith.truncf %45 : vector<4x4xf32> to vector<4x4xbf16>
    %c8 = arith.constant 8 : index
    %c0_31 = arith.constant 0 : index
    %c0_32 = arith.constant 0 : index
    %47 = vector.load %arg6[%c8, %c0_31, %c0_32] : memref<9x4x4xf32, #tpu.memory_space<vmem>>, vector<1x4x4xf32>
    %48 = vector.shape_cast %47 : vector<1x4x4xf32> to vector<4x4xf32>
    %49 = arith.truncf %48 : vector<4x4xf32> to vector<4x4xbf16>
    %c0_33 = arith.constant 0 : index
    %c0_34 = arith.constant 0 : index
    %c0_35 = arith.constant 0 : index
    %50 = vector.load %arg7[%c0_33, %c0_34, %c0_35] : memref<9x1x256xf32, #tpu.memory_space<vmem>>, vector<1x1x256xf32>
    %51 = vector.shape_cast %50 : vector<1x1x256xf32> to vector<1x256xf32>
    %c1_36 = arith.constant 1 : index
    %c0_37 = arith.constant 0 : index
    %c0_38 = arith.constant 0 : index
    %52 = vector.load %arg7[%c1_36, %c0_37, %c0_38] : memref<9x1x256xf32, #tpu.memory_space<vmem>>, vector<1x1x256xf32>
    %53 = vector.shape_cast %52 : vector<1x1x256xf32> to vector<1x256xf32>
    %c2_39 = arith.constant 2 : index
    %c0_40 = arith.constant 0 : index
    %c0_41 = arith.constant 0 : index
    %54 = vector.load %arg7[%c2_39, %c0_40, %c0_41] : memref<9x1x256xf32, #tpu.memory_space<vmem>>, vector<1x1x256xf32>
    %55 = vector.shape_cast %54 : vector<1x1x256xf32> to vector<1x256xf32>
    %c3_42 = arith.constant 3 : index
    %c0_43 = arith.constant 0 : index
    %c0_44 = arith.constant 0 : index
    %56 = vector.load %arg7[%c3_42, %c0_43, %c0_44] : memref<9x1x256xf32, #tpu.memory_space<vmem>>, vector<1x1x256xf32>
    %57 = vector.shape_cast %56 : vector<1x1x256xf32> to vector<1x256xf32>
    %c4_45 = arith.constant 4 : index
    %c0_46 = arith.constant 0 : index
    %c0_47 = arith.constant 0 : index
    %58 = vector.load %arg7[%c4_45, %c0_46, %c0_47] : memref<9x1x256xf32, #tpu.memory_space<vmem>>, vector<1x1x256xf32>
    %59 = vector.shape_cast %58 : vector<1x1x256xf32> to vector<1x256xf32>
    %c5_48 = arith.constant 5 : index
    %c0_49 = arith.constant 0 : index
    %c0_50 = arith.constant 0 : index
    %60 = vector.load %arg7[%c5_48, %c0_49, %c0_50] : memref<9x1x256xf32, #tpu.memory_space<vmem>>, vector<1x1x256xf32>
    %61 = vector.shape_cast %60 : vector<1x1x256xf32> to vector<1x256xf32>
    %c6_51 = arith.constant 6 : index
    %c0_52 = arith.constant 0 : index
    %c0_53 = arith.constant 0 : index
    %62 = vector.load %arg7[%c6_51, %c0_52, %c0_53] : memref<9x1x256xf32, #tpu.memory_space<vmem>>, vector<1x1x256xf32>
    %63 = vector.shape_cast %62 : vector<1x1x256xf32> to vector<1x256xf32>
    %c7_54 = arith.constant 7 : index
    %c0_55 = arith.constant 0 : index
    %c0_56 = arith.constant 0 : index
    %64 = vector.load %arg7[%c7_54, %c0_55, %c0_56] : memref<9x1x256xf32, #tpu.memory_space<vmem>>, vector<1x1x256xf32>
    %65 = vector.shape_cast %64 : vector<1x1x256xf32> to vector<1x256xf32>
    %c8_57 = arith.constant 8 : index
    %c0_58 = arith.constant 0 : index
    %c0_59 = arith.constant 0 : index
    %66 = vector.load %arg7[%c8_57, %c0_58, %c0_59] : memref<9x1x256xf32, #tpu.memory_space<vmem>>, vector<1x1x256xf32>
    %67 = vector.shape_cast %66 : vector<1x1x256xf32> to vector<1x256xf32>
    %c0_60 = arith.constant 0 : index
    %c0_61 = arith.constant 0 : index
    %68 = vector.load %arg11[%c0_60, %c0_61] : memref<4x256xf32, #tpu.memory_space<vmem>>, vector<4x256xf32>
    %cst_62 = arith.constant 0.000000e+00 : f32
    %69 = vector.broadcast %cst_62 : f32 to vector<4x256xf32>
    %c17_i32 = arith.constant 17 : i32
    %70 = tpu.dynamic_rotate %68 by %c17_i32 dim 1 : vector<4x256xf32>, i32 -> vector<4x256xf32>
    %71 = vector.broadcast %51 : vector<1x256xf32> to vector<4x256xf32>
    %72 = arith.mulf %70, %71 : vector<4x256xf32>
    %73 = arith.truncf %72 : vector<4x256xf32> to vector<4x256xbf16>
    %cst_63 = arith.constant dense<0.000000e+00> : vector<4x256xf32>
    %74 = tpu.matmul %25, %73, %cst_63 {dimension_numbers = #tpu.dot_dimension_numbers<[1], [0], [0], [1], [0, 0, 1, 1], [], []>} : vector<4x4xbf16>, vector<4x256xbf16>, vector<4x256xf32> -> vector<4x256xf32>
    %75 = arith.addf %69, %74 : vector<4x256xf32>
    %c16_i32 = arith.constant 16 : i32
    %76 = tpu.dynamic_rotate %68 by %c16_i32 dim 1 : vector<4x256xf32>, i32 -> vector<4x256xf32>
    %77 = vector.broadcast %53 : vector<1x256xf32> to vector<4x256xf32>
    %78 = arith.mulf %76, %77 : vector<4x256xf32>
    %79 = arith.truncf %78 : vector<4x256xf32> to vector<4x256xbf16>
    %cst_64 = arith.constant dense<0.000000e+00> : vector<4x256xf32>
    %80 = tpu.matmul %28, %79, %cst_64 {dimension_numbers = #tpu.dot_dimension_numbers<[1], [0], [0], [1], [0, 0, 1, 1], [], []>} : vector<4x4xbf16>, vector<4x256xbf16>, vector<4x256xf32> -> vector<4x256xf32>
    %81 = arith.addf %75, %80 : vector<4x256xf32>
    %c15_i32 = arith.constant 15 : i32
    %82 = tpu.dynamic_rotate %68 by %c15_i32 dim 1 : vector<4x256xf32>, i32 -> vector<4x256xf32>
    %83 = vector.broadcast %55 : vector<1x256xf32> to vector<4x256xf32>
    %84 = arith.mulf %82, %83 : vector<4x256xf32>
    %85 = arith.truncf %84 : vector<4x256xf32> to vector<4x256xbf16>
    %cst_65 = arith.constant dense<0.000000e+00> : vector<4x256xf32>
    %86 = tpu.matmul %31, %85, %cst_65 {dimension_numbers = #tpu.dot_dimension_numbers<[1], [0], [0], [1], [0, 0, 1, 1], [], []>} : vector<4x4xbf16>, vector<4x256xbf16>, vector<4x256xf32> -> vector<4x256xf32>
    %87 = arith.addf %81, %86 : vector<4x256xf32>
    %c1_i32 = arith.constant 1 : i32
    %88 = tpu.dynamic_rotate %68 by %c1_i32 dim 1 : vector<4x256xf32>, i32 -> vector<4x256xf32>
    %89 = vector.broadcast %57 : vector<1x256xf32> to vector<4x256xf32>
    %90 = arith.mulf %88, %89 : vector<4x256xf32>
    %91 = arith.truncf %90 : vector<4x256xf32> to vector<4x256xbf16>
    %cst_66 = arith.constant dense<0.000000e+00> : vector<4x256xf32>
    %92 = tpu.matmul %34, %91, %cst_66 {dimension_numbers = #tpu.dot_dimension_numbers<[1], [0], [0], [1], [0, 0, 1, 1], [], []>} : vector<4x4xbf16>, vector<4x256xbf16>, vector<4x256xf32> -> vector<4x256xf32>
    %93 = arith.addf %87, %92 : vector<4x256xf32>
    %94 = vector.broadcast %59 : vector<1x256xf32> to vector<4x256xf32>
    %95 = arith.mulf %68, %94 : vector<4x256xf32>
    %96 = arith.truncf %95 : vector<4x256xf32> to vector<4x256xbf16>
    %cst_67 = arith.constant dense<0.000000e+00> : vector<4x256xf32>
    %97 = tpu.matmul %37, %96, %cst_67 {dimension_numbers = #tpu.dot_dimension_numbers<[1], [0], [0], [1], [0, 0, 1, 1], [], []>} : vector<4x4xbf16>, vector<4x256xbf16>, vector<4x256xf32> -> vector<4x256xf32>
    %98 = arith.addf %93, %97 : vector<4x256xf32>
    %c255_i32 = arith.constant 255 : i32
    %99 = tpu.dynamic_rotate %68 by %c255_i32 dim 1 : vector<4x256xf32>, i32 -> vector<4x256xf32>
    %100 = vector.broadcast %61 : vector<1x256xf32> to vector<4x256xf32>
    %101 = arith.mulf %99, %100 : vector<4x256xf32>
    %102 = arith.truncf %101 : vector<4x256xf32> to vector<4x256xbf16>
    %cst_68 = arith.constant dense<0.000000e+00> : vector<4x256xf32>
    %103 = tpu.matmul %40, %102, %cst_68 {dimension_numbers = #tpu.dot_dimension_numbers<[1], [0], [0], [1], [0, 0, 1, 1], [], []>} : vector<4x4xbf16>, vector<4x256xbf16>, vector<4x256xf32> -> vector<4x256xf32>
    %104 = arith.addf %98, %103 : vector<4x256xf32>
    %c241_i32 = arith.constant 241 : i32
    %105 = tpu.dynamic_rotate %68 by %c241_i32 dim 1 : vector<4x256xf32>, i32 -> vector<4x256xf32>
    %106 = vector.broadcast %63 : vector<1x256xf32> to vector<4x256xf32>
    %107 = arith.mulf %105, %106 : vector<4x256xf32>
    %108 = arith.truncf %107 : vector<4x256xf32> to vector<4x256xbf16>
    %cst_69 = arith.constant dense<0.000000e+00> : vector<4x256xf32>
    %109 = tpu.matmul %43, %108, %cst_69 {dimension_numbers = #tpu.dot_dimension_numbers<[1], [0], [0], [1], [0, 0, 1, 1], [], []>} : vector<4x4xbf16>, vector<4x256xbf16>, vector<4x256xf32> -> vector<4x256xf32>
    %110 = arith.addf %104, %109 : vector<4x256xf32>
    %c240_i32 = arith.constant 240 : i32
    %111 = tpu.dynamic_rotate %68 by %c240_i32 dim 1 : vector<4x256xf32>, i32 -> vector<4x256xf32>
    %112 = vector.broadcast %65 : vector<1x256xf32> to vector<4x256xf32>
    %113 = arith.mulf %111, %112 : vector<4x256xf32>
    %114 = arith.truncf %113 : vector<4x256xf32> to vector<4x256xbf16>
    %cst_70 = arith.constant dense<0.000000e+00> : vector<4x256xf32>
    %115 = tpu.matmul %46, %114, %cst_70 {dimension_numbers = #tpu.dot_dimension_numbers<[1], [0], [0], [1], [0, 0, 1, 1], [], []>} : vector<4x4xbf16>, vector<4x256xbf16>, vector<4x256xf32> -> vector<4x256xf32>
    %116 = arith.addf %110, %115 : vector<4x256xf32>
    %c239_i32 = arith.constant 239 : i32
    %117 = tpu.dynamic_rotate %68 by %c239_i32 dim 1 : vector<4x256xf32>, i32 -> vector<4x256xf32>
    %118 = vector.broadcast %67 : vector<1x256xf32> to vector<4x256xf32>
    %119 = arith.mulf %117, %118 : vector<4x256xf32>
    %120 = arith.truncf %119 : vector<4x256xf32> to vector<4x256xbf16>
    %cst_71 = arith.constant dense<0.000000e+00> : vector<4x256xf32>
    %121 = tpu.matmul %49, %120, %cst_71 {dimension_numbers = #tpu.dot_dimension_numbers<[1], [0], [0], [1], [0, 0, 1, 1], [], []>} : vector<4x4xbf16>, vector<4x256xbf16>, vector<4x256xf32> -> vector<4x256xf32>
    %122 = arith.addf %116, %121 : vector<4x256xf32>
    %c0_72 = arith.constant 0 : index
    %c0_73 = arith.constant 0 : index
    %c0_74 = arith.constant 0 : index
    %123 = vector.load %arg8[%c0_72, %c0_73, %c0_74] : memref<5x4x1xf32, #tpu.memory_space<vmem>>, vector<1x4x1xf32>
    %124 = vector.shape_cast %123 : vector<1x4x1xf32> to vector<4x1xf32>
    %cst_75 = arith.constant 1.000000e+00 : f32
    %125 = vector.broadcast %cst_75 : f32 to vector<4x1xf32>
    %126 = arith.addf %125, %16 : vector<4x1xf32>
    %127 = vector.broadcast %126 : vector<4x1xf32> to vector<4x256xf32>
    %128 = arith.mulf %122, %127 : vector<4x256xf32>
    %129 = vector.broadcast %124 : vector<4x1xf32> to vector<4x256xf32>
    %130 = arith.addf %128, %129 : vector<4x256xf32>
    %cst_76 = arith.constant 1.000000e+00 : f32
    %131 = vector.broadcast %cst_76 : f32 to vector<4x1xf32>
    %132 = arith.addf %131, %21 : vector<4x1xf32>
    %133 = vector.broadcast %132 : vector<4x1xf32> to vector<4x256xf32>
    %134 = arith.mulf %122, %133 : vector<4x256xf32>
    %135 = vector.broadcast %124 : vector<4x1xf32> to vector<4x256xf32>
    %136 = arith.addf %134, %135 : vector<4x256xf32>
    %137 = arith.subf %136, %130 : vector<4x256xf32>
    %138 = vector.broadcast %22 : f32 to vector<4x256xf32>
    %139 = arith.mulf %138, %137 : vector<4x256xf32>
    %140 = arith.addf %130, %139 : vector<4x256xf32>
    %c0_77 = arith.constant 0 : index
    %c0_78 = arith.constant 0 : index
    %141 = memref.load %arg1[%c0_77, %c0_78] : memref<5x8xf32, #tpu.memory_space<smem>>
    %c0_79 = arith.constant 0 : index
    %c1_80 = arith.constant 1 : index
    %142 = memref.load %arg1[%c0_79, %c1_80] : memref<5x8xf32, #tpu.memory_space<smem>>
    %c0_81 = arith.constant 0 : index
    %c2_82 = arith.constant 2 : index
    %143 = memref.load %arg1[%c0_81, %c2_82] : memref<5x8xf32, #tpu.memory_space<smem>>
    %c0_83 = arith.constant 0 : index
    %c3_84 = arith.constant 3 : index
    %144 = memref.load %arg1[%c0_83, %c3_84] : memref<5x8xf32, #tpu.memory_space<smem>>
    %145 = vector.broadcast %142 : f32 to vector<4x256xf32>
    %146 = arith.mulf %145, %140 : vector<4x256xf32>
    %147 = arith.subf %68, %146 : vector<4x256xf32>
    %148 = vector.broadcast %141 : f32 to vector<4x256xf32>
    %149 = arith.mulf %147, %148 : vector<4x256xf32>
    %150 = vector.broadcast %143 : f32 to vector<4x256xf32>
    %151 = arith.mulf %150, %149 : vector<4x256xf32>
    %152 = vector.broadcast %144 : f32 to vector<4x256xf32>
    %153 = arith.mulf %152, %140 : vector<4x256xf32>
    %154 = arith.addf %151, %153 : vector<4x256xf32>
    %cst_85 = arith.constant 0.000000e+00 : f32
    %155 = vector.broadcast %cst_85 : f32 to vector<4x256xf32>
    %c17_i32_86 = arith.constant 17 : i32
    %156 = tpu.dynamic_rotate %154 by %c17_i32_86 dim 1 : vector<4x256xf32>, i32 -> vector<4x256xf32>
    %157 = vector.broadcast %51 : vector<1x256xf32> to vector<4x256xf32>
    %158 = arith.mulf %156, %157 : vector<4x256xf32>
    %159 = arith.truncf %158 : vector<4x256xf32> to vector<4x256xbf16>
    %cst_87 = arith.constant dense<0.000000e+00> : vector<4x256xf32>
    %160 = tpu.matmul %25, %159, %cst_87 {dimension_numbers = #tpu.dot_dimension_numbers<[1], [0], [0], [1], [0, 0, 1, 1], [], []>} : vector<4x4xbf16>, vector<4x256xbf16>, vector<4x256xf32> -> vector<4x256xf32>
    %161 = arith.addf %155, %160 : vector<4x256xf32>
    %c16_i32_88 = arith.constant 16 : i32
    %162 = tpu.dynamic_rotate %154 by %c16_i32_88 dim 1 : vector<4x256xf32>, i32 -> vector<4x256xf32>
    %163 = vector.broadcast %53 : vector<1x256xf32> to vector<4x256xf32>
    %164 = arith.mulf %162, %163 : vector<4x256xf32>
    %165 = arith.truncf %164 : vector<4x256xf32> to vector<4x256xbf16>
    %cst_89 = arith.constant dense<0.000000e+00> : vector<4x256xf32>
    %166 = tpu.matmul %28, %165, %cst_89 {dimension_numbers = #tpu.dot_dimension_numbers<[1], [0], [0], [1], [0, 0, 1, 1], [], []>} : vector<4x4xbf16>, vector<4x256xbf16>, vector<4x256xf32> -> vector<4x256xf32>
    %167 = arith.addf %161, %166 : vector<4x256xf32>
    %c15_i32_90 = arith.constant 15 : i32
    %168 = tpu.dynamic_rotate %154 by %c15_i32_90 dim 1 : vector<4x256xf32>, i32 -> vector<4x256xf32>
    %169 = vector.broadcast %55 : vector<1x256xf32> to vector<4x256xf32>
    %170 = arith.mulf %168, %169 : vector<4x256xf32>
    %171 = arith.truncf %170 : vector<4x256xf32> to vector<4x256xbf16>
    %cst_91 = arith.constant dense<0.000000e+00> : vector<4x256xf32>
    %172 = tpu.matmul %31, %171, %cst_91 {dimension_numbers = #tpu.dot_dimension_numbers<[1], [0], [0], [1], [0, 0, 1, 1], [], []>} : vector<4x4xbf16>, vector<4x256xbf16>, vector<4x256xf32> -> vector<4x256xf32>
    %173 = arith.addf %167, %172 : vector<4x256xf32>
    %c1_i32_92 = arith.constant 1 : i32
    %174 = tpu.dynamic_rotate %154 by %c1_i32_92 dim 1 : vector<4x256xf32>, i32 -> vector<4x256xf32>
    %175 = vector.broadcast %57 : vector<1x256xf32> to vector<4x256xf32>
    %176 = arith.mulf %174, %175 : vector<4x256xf32>
    %177 = arith.truncf %176 : vector<4x256xf32> to vector<4x256xbf16>
    %cst_93 = arith.constant dense<0.000000e+00> : vector<4x256xf32>
    %178 = tpu.matmul %34, %177, %cst_93 {dimension_numbers = #tpu.dot_dimension_numbers<[1], [0], [0], [1], [0, 0, 1, 1], [], []>} : vector<4x4xbf16>, vector<4x256xbf16>, vector<4x256xf32> -> vector<4x256xf32>
    %179 = arith.addf %173, %178 : vector<4x256xf32>
    %180 = vector.broadcast %59 : vector<1x256xf32> to vector<4x256xf32>
    %181 = arith.mulf %154, %180 : vector<4x256xf32>
    %182 = arith.truncf %181 : vector<4x256xf32> to vector<4x256xbf16>
    %cst_94 = arith.constant dense<0.000000e+00> : vector<4x256xf32>
    %183 = tpu.matmul %37, %182, %cst_94 {dimension_numbers = #tpu.dot_dimension_numbers<[1], [0], [0], [1], [0, 0, 1, 1], [], []>} : vector<4x4xbf16>, vector<4x256xbf16>, vector<4x256xf32> -> vector<4x256xf32>
    %184 = arith.addf %179, %183 : vector<4x256xf32>
    %c255_i32_95 = arith.constant 255 : i32
    %185 = tpu.dynamic_rotate %154 by %c255_i32_95 dim 1 : vector<4x256xf32>, i32 -> vector<4x256xf32>
    %186 = vector.broadcast %61 : vector<1x256xf32> to vector<4x256xf32>
    %187 = arith.mulf %185, %186 : vector<4x256xf32>
    %188 = arith.truncf %187 : vector<4x256xf32> to vector<4x256xbf16>
    %cst_96 = arith.constant dense<0.000000e+00> : vector<4x256xf32>
    %189 = tpu.matmul %40, %188, %cst_96 {dimension_numbers = #tpu.dot_dimension_numbers<[1], [0], [0], [1], [0, 0, 1, 1], [], []>} : vector<4x4xbf16>, vector<4x256xbf16>, vector<4x256xf32> -> vector<4x256xf32>
    %190 = arith.addf %184, %189 : vector<4x256xf32>
    %c241_i32_97 = arith.constant 241 : i32
    %191 = tpu.dynamic_rotate %154 by %c241_i32_97 dim 1 : vector<4x256xf32>, i32 -> vector<4x256xf32>
    %192 = vector.broadcast %63 : vector<1x256xf32> to vector<4x256xf32>
    %193 = arith.mulf %191, %192 : vector<4x256xf32>
    %194 = arith.truncf %193 : vector<4x256xf32> to vector<4x256xbf16>
    %cst_98 = arith.constant dense<0.000000e+00> : vector<4x256xf32>
    %195 = tpu.matmul %43, %194, %cst_98 {dimension_numbers = #tpu.dot_dimension_numbers<[1], [0], [0], [1], [0, 0, 1, 1], [], []>} : vector<4x4xbf16>, vector<4x256xbf16>, vector<4x256xf32> -> vector<4x256xf32>
    %196 = arith.addf %190, %195 : vector<4x256xf32>
    %c240_i32_99 = arith.constant 240 : i32
    %197 = tpu.dynamic_rotate %154 by %c240_i32_99 dim 1 : vector<4x256xf32>, i32 -> vector<4x256xf32>
    %198 = vector.broadcast %65 : vector<1x256xf32> to vector<4x256xf32>
    %199 = arith.mulf %197, %198 : vector<4x256xf32>
    %200 = arith.truncf %199 : vector<4x256xf32> to vector<4x256xbf16>
    %cst_100 = arith.constant dense<0.000000e+00> : vector<4x256xf32>
    %201 = tpu.matmul %46, %200, %cst_100 {dimension_numbers = #tpu.dot_dimension_numbers<[1], [0], [0], [1], [0, 0, 1, 1], [], []>} : vector<4x4xbf16>, vector<4x256xbf16>, vector<4x256xf32> -> vector<4x256xf32>
    %202 = arith.addf %196, %201 : vector<4x256xf32>
    %c239_i32_101 = arith.constant 239 : i32
    %203 = tpu.dynamic_rotate %154 by %c239_i32_101 dim 1 : vector<4x256xf32>, i32 -> vector<4x256xf32>
    %204 = vector.broadcast %67 : vector<1x256xf32> to vector<4x256xf32>
    %205 = arith.mulf %203, %204 : vector<4x256xf32>
    %206 = arith.truncf %205 : vector<4x256xf32> to vector<4x256xbf16>
    %cst_102 = arith.constant dense<0.000000e+00> : vector<4x256xf32>
    %207 = tpu.matmul %49, %206, %cst_102 {dimension_numbers = #tpu.dot_dimension_numbers<[1], [0], [0], [1], [0, 0, 1, 1], [], []>} : vector<4x4xbf16>, vector<4x256xbf16>, vector<4x256xf32> -> vector<4x256xf32>
    %208 = arith.addf %202, %207 : vector<4x256xf32>
    %c1_103 = arith.constant 1 : index
    %c0_104 = arith.constant 0 : index
    %c0_105 = arith.constant 0 : index
    %209 = vector.load %arg8[%c1_103, %c0_104, %c0_105] : memref<5x4x1xf32, #tpu.memory_space<vmem>>, vector<1x4x1xf32>
    %210 = vector.shape_cast %209 : vector<1x4x1xf32> to vector<4x1xf32>
    %cst_106 = arith.constant 1.000000e+00 : f32
    %211 = vector.broadcast %cst_106 : f32 to vector<4x1xf32>
    %212 = arith.addf %211, %16 : vector<4x1xf32>
    %213 = vector.broadcast %212 : vector<4x1xf32> to vector<4x256xf32>
    %214 = arith.mulf %208, %213 : vector<4x256xf32>
    %215 = vector.broadcast %210 : vector<4x1xf32> to vector<4x256xf32>
    %216 = arith.addf %214, %215 : vector<4x256xf32>
    %cst_107 = arith.constant 1.000000e+00 : f32
    %217 = vector.broadcast %cst_107 : f32 to vector<4x1xf32>
    %218 = arith.addf %217, %21 : vector<4x1xf32>
    %219 = vector.broadcast %218 : vector<4x1xf32> to vector<4x256xf32>
    %220 = arith.mulf %208, %219 : vector<4x256xf32>
    %221 = vector.broadcast %210 : vector<4x1xf32> to vector<4x256xf32>
    %222 = arith.addf %220, %221 : vector<4x256xf32>
    %223 = arith.subf %222, %216 : vector<4x256xf32>
    %224 = vector.broadcast %22 : f32 to vector<4x256xf32>
    %225 = arith.mulf %224, %223 : vector<4x256xf32>
    %226 = arith.addf %216, %225 : vector<4x256xf32>
    %c1_108 = arith.constant 1 : index
    %c0_109 = arith.constant 0 : index
    %227 = memref.load %arg1[%c1_108, %c0_109] : memref<5x8xf32, #tpu.memory_space<smem>>
    %c1_110 = arith.constant 1 : index
    %c1_111 = arith.constant 1 : index
    %228 = memref.load %arg1[%c1_110, %c1_111] : memref<5x8xf32, #tpu.memory_space<smem>>
    %c1_112 = arith.constant 1 : index
    %c2_113 = arith.constant 2 : index
    %229 = memref.load %arg1[%c1_112, %c2_113] : memref<5x8xf32, #tpu.memory_space<smem>>
    %c1_114 = arith.constant 1 : index
    %c3_115 = arith.constant 3 : index
    %230 = memref.load %arg1[%c1_114, %c3_115] : memref<5x8xf32, #tpu.memory_space<smem>>
    %231 = vector.broadcast %228 : f32 to vector<4x256xf32>
    %232 = arith.mulf %231, %226 : vector<4x256xf32>
    %233 = arith.subf %154, %232 : vector<4x256xf32>
    %234 = vector.broadcast %227 : f32 to vector<4x256xf32>
    %235 = arith.mulf %233, %234 : vector<4x256xf32>
    %236 = vector.broadcast %229 : f32 to vector<4x256xf32>
    %237 = arith.mulf %236, %235 : vector<4x256xf32>
    %238 = vector.broadcast %230 : f32 to vector<4x256xf32>
    %239 = arith.mulf %238, %226 : vector<4x256xf32>
    %240 = arith.addf %237, %239 : vector<4x256xf32>
    %cst_116 = arith.constant 0.000000e+00 : f32
    %241 = vector.broadcast %cst_116 : f32 to vector<4x256xf32>
    %c17_i32_117 = arith.constant 17 : i32
    %242 = tpu.dynamic_rotate %240 by %c17_i32_117 dim 1 : vector<4x256xf32>, i32 -> vector<4x256xf32>
    %243 = vector.broadcast %51 : vector<1x256xf32> to vector<4x256xf32>
    %244 = arith.mulf %242, %243 : vector<4x256xf32>
    %245 = arith.truncf %244 : vector<4x256xf32> to vector<4x256xbf16>
    %cst_118 = arith.constant dense<0.000000e+00> : vector<4x256xf32>
    %246 = tpu.matmul %25, %245, %cst_118 {dimension_numbers = #tpu.dot_dimension_numbers<[1], [0], [0], [1], [0, 0, 1, 1], [], []>} : vector<4x4xbf16>, vector<4x256xbf16>, vector<4x256xf32> -> vector<4x256xf32>
    %247 = arith.addf %241, %246 : vector<4x256xf32>
    %c16_i32_119 = arith.constant 16 : i32
    %248 = tpu.dynamic_rotate %240 by %c16_i32_119 dim 1 : vector<4x256xf32>, i32 -> vector<4x256xf32>
    %249 = vector.broadcast %53 : vector<1x256xf32> to vector<4x256xf32>
    %250 = arith.mulf %248, %249 : vector<4x256xf32>
    %251 = arith.truncf %250 : vector<4x256xf32> to vector<4x256xbf16>
    %cst_120 = arith.constant dense<0.000000e+00> : vector<4x256xf32>
    %252 = tpu.matmul %28, %251, %cst_120 {dimension_numbers = #tpu.dot_dimension_numbers<[1], [0], [0], [1], [0, 0, 1, 1], [], []>} : vector<4x4xbf16>, vector<4x256xbf16>, vector<4x256xf32> -> vector<4x256xf32>
    %253 = arith.addf %247, %252 : vector<4x256xf32>
    %c15_i32_121 = arith.constant 15 : i32
    %254 = tpu.dynamic_rotate %240 by %c15_i32_121 dim 1 : vector<4x256xf32>, i32 -> vector<4x256xf32>
    %255 = vector.broadcast %55 : vector<1x256xf32> to vector<4x256xf32>
    %256 = arith.mulf %254, %255 : vector<4x256xf32>
    %257 = arith.truncf %256 : vector<4x256xf32> to vector<4x256xbf16>
    %cst_122 = arith.constant dense<0.000000e+00> : vector<4x256xf32>
    %258 = tpu.matmul %31, %257, %cst_122 {dimension_numbers = #tpu.dot_dimension_numbers<[1], [0], [0], [1], [0, 0, 1, 1], [], []>} : vector<4x4xbf16>, vector<4x256xbf16>, vector<4x256xf32> -> vector<4x256xf32>
    %259 = arith.addf %253, %258 : vector<4x256xf32>
    %c1_i32_123 = arith.constant 1 : i32
    %260 = tpu.dynamic_rotate %240 by %c1_i32_123 dim 1 : vector<4x256xf32>, i32 -> vector<4x256xf32>
    %261 = vector.broadcast %57 : vector<1x256xf32> to vector<4x256xf32>
    %262 = arith.mulf %260, %261 : vector<4x256xf32>
    %263 = arith.truncf %262 : vector<4x256xf32> to vector<4x256xbf16>
    %cst_124 = arith.constant dense<0.000000e+00> : vector<4x256xf32>
    %264 = tpu.matmul %34, %263, %cst_124 {dimension_numbers = #tpu.dot_dimension_numbers<[1], [0], [0], [1], [0, 0, 1, 1], [], []>} : vector<4x4xbf16>, vector<4x256xbf16>, vector<4x256xf32> -> vector<4x256xf32>
    %265 = arith.addf %259, %264 : vector<4x256xf32>
    %266 = vector.broadcast %59 : vector<1x256xf32> to vector<4x256xf32>
    %267 = arith.mulf %240, %266 : vector<4x256xf32>
    %268 = arith.truncf %267 : vector<4x256xf32> to vector<4x256xbf16>
    %cst_125 = arith.constant dense<0.000000e+00> : vector<4x256xf32>
    %269 = tpu.matmul %37, %268, %cst_125 {dimension_numbers = #tpu.dot_dimension_numbers<[1], [0], [0], [1], [0, 0, 1, 1], [], []>} : vector<4x4xbf16>, vector<4x256xbf16>, vector<4x256xf32> -> vector<4x256xf32>
    %270 = arith.addf %265, %269 : vector<4x256xf32>
    %c255_i32_126 = arith.constant 255 : i32
    %271 = tpu.dynamic_rotate %240 by %c255_i32_126 dim 1 : vector<4x256xf32>, i32 -> vector<4x256xf32>
    %272 = vector.broadcast %61 : vector<1x256xf32> to vector<4x256xf32>
    %273 = arith.mulf %271, %272 : vector<4x256xf32>
    %274 = arith.truncf %273 : vector<4x256xf32> to vector<4x256xbf16>
    %cst_127 = arith.constant dense<0.000000e+00> : vector<4x256xf32>
    %275 = tpu.matmul %40, %274, %cst_127 {dimension_numbers = #tpu.dot_dimension_numbers<[1], [0], [0], [1], [0, 0, 1, 1], [], []>} : vector<4x4xbf16>, vector<4x256xbf16>, vector<4x256xf32> -> vector<4x256xf32>
    %276 = arith.addf %270, %275 : vector<4x256xf32>
    %c241_i32_128 = arith.constant 241 : i32
    %277 = tpu.dynamic_rotate %240 by %c241_i32_128 dim 1 : vector<4x256xf32>, i32 -> vector<4x256xf32>
    %278 = vector.broadcast %63 : vector<1x256xf32> to vector<4x256xf32>
    %279 = arith.mulf %277, %278 : vector<4x256xf32>
    %280 = arith.truncf %279 : vector<4x256xf32> to vector<4x256xbf16>
    %cst_129 = arith.constant dense<0.000000e+00> : vector<4x256xf32>
    %281 = tpu.matmul %43, %280, %cst_129 {dimension_numbers = #tpu.dot_dimension_numbers<[1], [0], [0], [1], [0, 0, 1, 1], [], []>} : vector<4x4xbf16>, vector<4x256xbf16>, vector<4x256xf32> -> vector<4x256xf32>
    %282 = arith.addf %276, %281 : vector<4x256xf32>
    %c240_i32_130 = arith.constant 240 : i32
    %283 = tpu.dynamic_rotate %240 by %c240_i32_130 dim 1 : vector<4x256xf32>, i32 -> vector<4x256xf32>
    %284 = vector.broadcast %65 : vector<1x256xf32> to vector<4x256xf32>
    %285 = arith.mulf %283, %284 : vector<4x256xf32>
    %286 = arith.truncf %285 : vector<4x256xf32> to vector<4x256xbf16>
    %cst_131 = arith.constant dense<0.000000e+00> : vector<4x256xf32>
    %287 = tpu.matmul %46, %286, %cst_131 {dimension_numbers = #tpu.dot_dimension_numbers<[1], [0], [0], [1], [0, 0, 1, 1], [], []>} : vector<4x4xbf16>, vector<4x256xbf16>, vector<4x256xf32> -> vector<4x256xf32>
    %288 = arith.addf %282, %287 : vector<4x256xf32>
    %c239_i32_132 = arith.constant 239 : i32
    %289 = tpu.dynamic_rotate %240 by %c239_i32_132 dim 1 : vector<4x256xf32>, i32 -> vector<4x256xf32>
    %290 = vector.broadcast %67 : vector<1x256xf32> to vector<4x256xf32>
    %291 = arith.mulf %289, %290 : vector<4x256xf32>
    %292 = arith.truncf %291 : vector<4x256xf32> to vector<4x256xbf16>
    %cst_133 = arith.constant dense<0.000000e+00> : vector<4x256xf32>
    %293 = tpu.matmul %49, %292, %cst_133 {dimension_numbers = #tpu.dot_dimension_numbers<[1], [0], [0], [1], [0, 0, 1, 1], [], []>} : vector<4x4xbf16>, vector<4x256xbf16>, vector<4x256xf32> -> vector<4x256xf32>
    %294 = arith.addf %288, %293 : vector<4x256xf32>
    %c2_134 = arith.constant 2 : index
    %c0_135 = arith.constant 0 : index
    %c0_136 = arith.constant 0 : index
    %295 = vector.load %arg8[%c2_134, %c0_135, %c0_136] : memref<5x4x1xf32, #tpu.memory_space<vmem>>, vector<1x4x1xf32>
    %296 = vector.shape_cast %295 : vector<1x4x1xf32> to vector<4x1xf32>
    %cst_137 = arith.constant 1.000000e+00 : f32
    %297 = vector.broadcast %cst_137 : f32 to vector<4x1xf32>
    %298 = arith.addf %297, %16 : vector<4x1xf32>
    %299 = vector.broadcast %298 : vector<4x1xf32> to vector<4x256xf32>
    %300 = arith.mulf %294, %299 : vector<4x256xf32>
    %301 = vector.broadcast %296 : vector<4x1xf32> to vector<4x256xf32>
    %302 = arith.addf %300, %301 : vector<4x256xf32>
    %cst_138 = arith.constant 1.000000e+00 : f32
    %303 = vector.broadcast %cst_138 : f32 to vector<4x1xf32>
    %304 = arith.addf %303, %21 : vector<4x1xf32>
    %305 = vector.broadcast %304 : vector<4x1xf32> to vector<4x256xf32>
    %306 = arith.mulf %294, %305 : vector<4x256xf32>
    %307 = vector.broadcast %296 : vector<4x1xf32> to vector<4x256xf32>
    %308 = arith.addf %306, %307 : vector<4x256xf32>
    %309 = arith.subf %308, %302 : vector<4x256xf32>
    %310 = vector.broadcast %22 : f32 to vector<4x256xf32>
    %311 = arith.mulf %310, %309 : vector<4x256xf32>
    %312 = arith.addf %302, %311 : vector<4x256xf32>
    %c2_139 = arith.constant 2 : index
    %c0_140 = arith.constant 0 : index
    %313 = memref.load %arg1[%c2_139, %c0_140] : memref<5x8xf32, #tpu.memory_space<smem>>
    %c2_141 = arith.constant 2 : index
    %c1_142 = arith.constant 1 : index
    %314 = memref.load %arg1[%c2_141, %c1_142] : memref<5x8xf32, #tpu.memory_space<smem>>
    %c2_143 = arith.constant 2 : index
    %c2_144 = arith.constant 2 : index
    %315 = memref.load %arg1[%c2_143, %c2_144] : memref<5x8xf32, #tpu.memory_space<smem>>
    %c2_145 = arith.constant 2 : index
    %c3_146 = arith.constant 3 : index
    %316 = memref.load %arg1[%c2_145, %c3_146] : memref<5x8xf32, #tpu.memory_space<smem>>
    %317 = vector.broadcast %314 : f32 to vector<4x256xf32>
    %318 = arith.mulf %317, %312 : vector<4x256xf32>
    %319 = arith.subf %240, %318 : vector<4x256xf32>
    %320 = vector.broadcast %313 : f32 to vector<4x256xf32>
    %321 = arith.mulf %319, %320 : vector<4x256xf32>
    %322 = vector.broadcast %315 : f32 to vector<4x256xf32>
    %323 = arith.mulf %322, %321 : vector<4x256xf32>
    %324 = vector.broadcast %316 : f32 to vector<4x256xf32>
    %325 = arith.mulf %324, %312 : vector<4x256xf32>
    %326 = arith.addf %323, %325 : vector<4x256xf32>
    %cst_147 = arith.constant 0.000000e+00 : f32
    %327 = vector.broadcast %cst_147 : f32 to vector<4x256xf32>
    %c17_i32_148 = arith.constant 17 : i32
    %328 = tpu.dynamic_rotate %326 by %c17_i32_148 dim 1 : vector<4x256xf32>, i32 -> vector<4x256xf32>
    %329 = vector.broadcast %51 : vector<1x256xf32> to vector<4x256xf32>
    %330 = arith.mulf %328, %329 : vector<4x256xf32>
    %331 = arith.truncf %330 : vector<4x256xf32> to vector<4x256xbf16>
    %cst_149 = arith.constant dense<0.000000e+00> : vector<4x256xf32>
    %332 = tpu.matmul %25, %331, %cst_149 {dimension_numbers = #tpu.dot_dimension_numbers<[1], [0], [0], [1], [0, 0, 1, 1], [], []>} : vector<4x4xbf16>, vector<4x256xbf16>, vector<4x256xf32> -> vector<4x256xf32>
    %333 = arith.addf %327, %332 : vector<4x256xf32>
    %c16_i32_150 = arith.constant 16 : i32
    %334 = tpu.dynamic_rotate %326 by %c16_i32_150 dim 1 : vector<4x256xf32>, i32 -> vector<4x256xf32>
    %335 = vector.broadcast %53 : vector<1x256xf32> to vector<4x256xf32>
    %336 = arith.mulf %334, %335 : vector<4x256xf32>
    %337 = arith.truncf %336 : vector<4x256xf32> to vector<4x256xbf16>
    %cst_151 = arith.constant dense<0.000000e+00> : vector<4x256xf32>
    %338 = tpu.matmul %28, %337, %cst_151 {dimension_numbers = #tpu.dot_dimension_numbers<[1], [0], [0], [1], [0, 0, 1, 1], [], []>} : vector<4x4xbf16>, vector<4x256xbf16>, vector<4x256xf32> -> vector<4x256xf32>
    %339 = arith.addf %333, %338 : vector<4x256xf32>
    %c15_i32_152 = arith.constant 15 : i32
    %340 = tpu.dynamic_rotate %326 by %c15_i32_152 dim 1 : vector<4x256xf32>, i32 -> vector<4x256xf32>
    %341 = vector.broadcast %55 : vector<1x256xf32> to vector<4x256xf32>
    %342 = arith.mulf %340, %341 : vector<4x256xf32>
    %343 = arith.truncf %342 : vector<4x256xf32> to vector<4x256xbf16>
    %cst_153 = arith.constant dense<0.000000e+00> : vector<4x256xf32>
    %344 = tpu.matmul %31, %343, %cst_153 {dimension_numbers = #tpu.dot_dimension_numbers<[1], [0], [0], [1], [0, 0, 1, 1], [], []>} : vector<4x4xbf16>, vector<4x256xbf16>, vector<4x256xf32> -> vector<4x256xf32>
    %345 = arith.addf %339, %344 : vector<4x256xf32>
    %c1_i32_154 = arith.constant 1 : i32
    %346 = tpu.dynamic_rotate %326 by %c1_i32_154 dim 1 : vector<4x256xf32>, i32 -> vector<4x256xf32>
    %347 = vector.broadcast %57 : vector<1x256xf32> to vector<4x256xf32>
    %348 = arith.mulf %346, %347 : vector<4x256xf32>
    %349 = arith.truncf %348 : vector<4x256xf32> to vector<4x256xbf16>
    %cst_155 = arith.constant dense<0.000000e+00> : vector<4x256xf32>
    %350 = tpu.matmul %34, %349, %cst_155 {dimension_numbers = #tpu.dot_dimension_numbers<[1], [0], [0], [1], [0, 0, 1, 1], [], []>} : vector<4x4xbf16>, vector<4x256xbf16>, vector<4x256xf32> -> vector<4x256xf32>
    %351 = arith.addf %345, %350 : vector<4x256xf32>
    %352 = vector.broadcast %59 : vector<1x256xf32> to vector<4x256xf32>
    %353 = arith.mulf %326, %352 : vector<4x256xf32>
    %354 = arith.truncf %353 : vector<4x256xf32> to vector<4x256xbf16>
    %cst_156 = arith.constant dense<0.000000e+00> : vector<4x256xf32>
    %355 = tpu.matmul %37, %354, %cst_156 {dimension_numbers = #tpu.dot_dimension_numbers<[1], [0], [0], [1], [0, 0, 1, 1], [], []>} : vector<4x4xbf16>, vector<4x256xbf16>, vector<4x256xf32> -> vector<4x256xf32>
    %356 = arith.addf %351, %355 : vector<4x256xf32>
    %c255_i32_157 = arith.constant 255 : i32
    %357 = tpu.dynamic_rotate %326 by %c255_i32_157 dim 1 : vector<4x256xf32>, i32 -> vector<4x256xf32>
    %358 = vector.broadcast %61 : vector<1x256xf32> to vector<4x256xf32>
    %359 = arith.mulf %357, %358 : vector<4x256xf32>
    %360 = arith.truncf %359 : vector<4x256xf32> to vector<4x256xbf16>
    %cst_158 = arith.constant dense<0.000000e+00> : vector<4x256xf32>
    %361 = tpu.matmul %40, %360, %cst_158 {dimension_numbers = #tpu.dot_dimension_numbers<[1], [0], [0], [1], [0, 0, 1, 1], [], []>} : vector<4x4xbf16>, vector<4x256xbf16>, vector<4x256xf32> -> vector<4x256xf32>
    %362 = arith.addf %356, %361 : vector<4x256xf32>
    %c241_i32_159 = arith.constant 241 : i32
    %363 = tpu.dynamic_rotate %326 by %c241_i32_159 dim 1 : vector<4x256xf32>, i32 -> vector<4x256xf32>
    %364 = vector.broadcast %63 : vector<1x256xf32> to vector<4x256xf32>
    %365 = arith.mulf %363, %364 : vector<4x256xf32>
    %366 = arith.truncf %365 : vector<4x256xf32> to vector<4x256xbf16>
    %cst_160 = arith.constant dense<0.000000e+00> : vector<4x256xf32>
    %367 = tpu.matmul %43, %366, %cst_160 {dimension_numbers = #tpu.dot_dimension_numbers<[1], [0], [0], [1], [0, 0, 1, 1], [], []>} : vector<4x4xbf16>, vector<4x256xbf16>, vector<4x256xf32> -> vector<4x256xf32>
    %368 = arith.addf %362, %367 : vector<4x256xf32>
    %c240_i32_161 = arith.constant 240 : i32
    %369 = tpu.dynamic_rotate %326 by %c240_i32_161 dim 1 : vector<4x256xf32>, i32 -> vector<4x256xf32>
    %370 = vector.broadcast %65 : vector<1x256xf32> to vector<4x256xf32>
    %371 = arith.mulf %369, %370 : vector<4x256xf32>
    %372 = arith.truncf %371 : vector<4x256xf32> to vector<4x256xbf16>
    %cst_162 = arith.constant dense<0.000000e+00> : vector<4x256xf32>
    %373 = tpu.matmul %46, %372, %cst_162 {dimension_numbers = #tpu.dot_dimension_numbers<[1], [0], [0], [1], [0, 0, 1, 1], [], []>} : vector<4x4xbf16>, vector<4x256xbf16>, vector<4x256xf32> -> vector<4x256xf32>
    %374 = arith.addf %368, %373 : vector<4x256xf32>
    %c239_i32_163 = arith.constant 239 : i32
    %375 = tpu.dynamic_rotate %326 by %c239_i32_163 dim 1 : vector<4x256xf32>, i32 -> vector<4x256xf32>
    %376 = vector.broadcast %67 : vector<1x256xf32> to vector<4x256xf32>
    %377 = arith.mulf %375, %376 : vector<4x256xf32>
    %378 = arith.truncf %377 : vector<4x256xf32> to vector<4x256xbf16>
    %cst_164 = arith.constant dense<0.000000e+00> : vector<4x256xf32>
    %379 = tpu.matmul %49, %378, %cst_164 {dimension_numbers = #tpu.dot_dimension_numbers<[1], [0], [0], [1], [0, 0, 1, 1], [], []>} : vector<4x4xbf16>, vector<4x256xbf16>, vector<4x256xf32> -> vector<4x256xf32>
    %380 = arith.addf %374, %379 : vector<4x256xf32>
    %c3_165 = arith.constant 3 : index
    %c0_166 = arith.constant 0 : index
    %c0_167 = arith.constant 0 : index
    %381 = vector.load %arg8[%c3_165, %c0_166, %c0_167] : memref<5x4x1xf32, #tpu.memory_space<vmem>>, vector<1x4x1xf32>
    %382 = vector.shape_cast %381 : vector<1x4x1xf32> to vector<4x1xf32>
    %cst_168 = arith.constant 1.000000e+00 : f32
    %383 = vector.broadcast %cst_168 : f32 to vector<4x1xf32>
    %384 = arith.addf %383, %16 : vector<4x1xf32>
    %385 = vector.broadcast %384 : vector<4x1xf32> to vector<4x256xf32>
    %386 = arith.mulf %380, %385 : vector<4x256xf32>
    %387 = vector.broadcast %382 : vector<4x1xf32> to vector<4x256xf32>
    %388 = arith.addf %386, %387 : vector<4x256xf32>
    %cst_169 = arith.constant 1.000000e+00 : f32
    %389 = vector.broadcast %cst_169 : f32 to vector<4x1xf32>
    %390 = arith.addf %389, %21 : vector<4x1xf32>
    %391 = vector.broadcast %390 : vector<4x1xf32> to vector<4x256xf32>
    %392 = arith.mulf %380, %391 : vector<4x256xf32>
    %393 = vector.broadcast %382 : vector<4x1xf32> to vector<4x256xf32>
    %394 = arith.addf %392, %393 : vector<4x256xf32>
    %395 = arith.subf %394, %388 : vector<4x256xf32>
    %396 = vector.broadcast %22 : f32 to vector<4x256xf32>
    %397 = arith.mulf %396, %395 : vector<4x256xf32>
    %398 = arith.addf %388, %397 : vector<4x256xf32>
    %c3_170 = arith.constant 3 : index
    %c0_171 = arith.constant 0 : index
    %399 = memref.load %arg1[%c3_170, %c0_171] : memref<5x8xf32, #tpu.memory_space<smem>>
    %c3_172 = arith.constant 3 : index
    %c1_173 = arith.constant 1 : index
    %400 = memref.load %arg1[%c3_172, %c1_173] : memref<5x8xf32, #tpu.memory_space<smem>>
    %c3_174 = arith.constant 3 : index
    %c2_175 = arith.constant 2 : index
    %401 = memref.load %arg1[%c3_174, %c2_175] : memref<5x8xf32, #tpu.memory_space<smem>>
    %c3_176 = arith.constant 3 : index
    %c3_177 = arith.constant 3 : index
    %402 = memref.load %arg1[%c3_176, %c3_177] : memref<5x8xf32, #tpu.memory_space<smem>>
    %403 = vector.broadcast %400 : f32 to vector<4x256xf32>
    %404 = arith.mulf %403, %398 : vector<4x256xf32>
    %405 = arith.subf %326, %404 : vector<4x256xf32>
    %406 = vector.broadcast %399 : f32 to vector<4x256xf32>
    %407 = arith.mulf %405, %406 : vector<4x256xf32>
    %408 = vector.broadcast %401 : f32 to vector<4x256xf32>
    %409 = arith.mulf %408, %407 : vector<4x256xf32>
    %410 = vector.broadcast %402 : f32 to vector<4x256xf32>
    %411 = arith.mulf %410, %398 : vector<4x256xf32>
    %412 = arith.addf %409, %411 : vector<4x256xf32>
    %cst_178 = arith.constant 0.000000e+00 : f32
    %413 = vector.broadcast %cst_178 : f32 to vector<4x256xf32>
    %c17_i32_179 = arith.constant 17 : i32
    %414 = tpu.dynamic_rotate %412 by %c17_i32_179 dim 1 : vector<4x256xf32>, i32 -> vector<4x256xf32>
    %415 = vector.broadcast %51 : vector<1x256xf32> to vector<4x256xf32>
    %416 = arith.mulf %414, %415 : vector<4x256xf32>
    %417 = arith.truncf %416 : vector<4x256xf32> to vector<4x256xbf16>
    %cst_180 = arith.constant dense<0.000000e+00> : vector<4x256xf32>
    %418 = tpu.matmul %25, %417, %cst_180 {dimension_numbers = #tpu.dot_dimension_numbers<[1], [0], [0], [1], [0, 0, 1, 1], [], []>} : vector<4x4xbf16>, vector<4x256xbf16>, vector<4x256xf32> -> vector<4x256xf32>
    %419 = arith.addf %413, %418 : vector<4x256xf32>
    %c16_i32_181 = arith.constant 16 : i32
    %420 = tpu.dynamic_rotate %412 by %c16_i32_181 dim 1 : vector<4x256xf32>, i32 -> vector<4x256xf32>
    %421 = vector.broadcast %53 : vector<1x256xf32> to vector<4x256xf32>
    %422 = arith.mulf %420, %421 : vector<4x256xf32>
    %423 = arith.truncf %422 : vector<4x256xf32> to vector<4x256xbf16>
    %cst_182 = arith.constant dense<0.000000e+00> : vector<4x256xf32>
    %424 = tpu.matmul %28, %423, %cst_182 {dimension_numbers = #tpu.dot_dimension_numbers<[1], [0], [0], [1], [0, 0, 1, 1], [], []>} : vector<4x4xbf16>, vector<4x256xbf16>, vector<4x256xf32> -> vector<4x256xf32>
    %425 = arith.addf %419, %424 : vector<4x256xf32>
    %c15_i32_183 = arith.constant 15 : i32
    %426 = tpu.dynamic_rotate %412 by %c15_i32_183 dim 1 : vector<4x256xf32>, i32 -> vector<4x256xf32>
    %427 = vector.broadcast %55 : vector<1x256xf32> to vector<4x256xf32>
    %428 = arith.mulf %426, %427 : vector<4x256xf32>
    %429 = arith.truncf %428 : vector<4x256xf32> to vector<4x256xbf16>
    %cst_184 = arith.constant dense<0.000000e+00> : vector<4x256xf32>
    %430 = tpu.matmul %31, %429, %cst_184 {dimension_numbers = #tpu.dot_dimension_numbers<[1], [0], [0], [1], [0, 0, 1, 1], [], []>} : vector<4x4xbf16>, vector<4x256xbf16>, vector<4x256xf32> -> vector<4x256xf32>
    %431 = arith.addf %425, %430 : vector<4x256xf32>
    %c1_i32_185 = arith.constant 1 : i32
    %432 = tpu.dynamic_rotate %412 by %c1_i32_185 dim 1 : vector<4x256xf32>, i32 -> vector<4x256xf32>
    %433 = vector.broadcast %57 : vector<1x256xf32> to vector<4x256xf32>
    %434 = arith.mulf %432, %433 : vector<4x256xf32>
    %435 = arith.truncf %434 : vector<4x256xf32> to vector<4x256xbf16>
    %cst_186 = arith.constant dense<0.000000e+00> : vector<4x256xf32>
    %436 = tpu.matmul %34, %435, %cst_186 {dimension_numbers = #tpu.dot_dimension_numbers<[1], [0], [0], [1], [0, 0, 1, 1], [], []>} : vector<4x4xbf16>, vector<4x256xbf16>, vector<4x256xf32> -> vector<4x256xf32>
    %437 = arith.addf %431, %436 : vector<4x256xf32>
    %438 = vector.broadcast %59 : vector<1x256xf32> to vector<4x256xf32>
    %439 = arith.mulf %412, %438 : vector<4x256xf32>
    %440 = arith.truncf %439 : vector<4x256xf32> to vector<4x256xbf16>
    %cst_187 = arith.constant dense<0.000000e+00> : vector<4x256xf32>
    %441 = tpu.matmul %37, %440, %cst_187 {dimension_numbers = #tpu.dot_dimension_numbers<[1], [0], [0], [1], [0, 0, 1, 1], [], []>} : vector<4x4xbf16>, vector<4x256xbf16>, vector<4x256xf32> -> vector<4x256xf32>
    %442 = arith.addf %437, %441 : vector<4x256xf32>
    %c255_i32_188 = arith.constant 255 : i32
    %443 = tpu.dynamic_rotate %412 by %c255_i32_188 dim 1 : vector<4x256xf32>, i32 -> vector<4x256xf32>
    %444 = vector.broadcast %61 : vector<1x256xf32> to vector<4x256xf32>
    %445 = arith.mulf %443, %444 : vector<4x256xf32>
    %446 = arith.truncf %445 : vector<4x256xf32> to vector<4x256xbf16>
    %cst_189 = arith.constant dense<0.000000e+00> : vector<4x256xf32>
    %447 = tpu.matmul %40, %446, %cst_189 {dimension_numbers = #tpu.dot_dimension_numbers<[1], [0], [0], [1], [0, 0, 1, 1], [], []>} : vector<4x4xbf16>, vector<4x256xbf16>, vector<4x256xf32> -> vector<4x256xf32>
    %448 = arith.addf %442, %447 : vector<4x256xf32>
    %c241_i32_190 = arith.constant 241 : i32
    %449 = tpu.dynamic_rotate %412 by %c241_i32_190 dim 1 : vector<4x256xf32>, i32 -> vector<4x256xf32>
    %450 = vector.broadcast %63 : vector<1x256xf32> to vector<4x256xf32>
    %451 = arith.mulf %449, %450 : vector<4x256xf32>
    %452 = arith.truncf %451 : vector<4x256xf32> to vector<4x256xbf16>
    %cst_191 = arith.constant dense<0.000000e+00> : vector<4x256xf32>
    %453 = tpu.matmul %43, %452, %cst_191 {dimension_numbers = #tpu.dot_dimension_numbers<[1], [0], [0], [1], [0, 0, 1, 1], [], []>} : vector<4x4xbf16>, vector<4x256xbf16>, vector<4x256xf32> -> vector<4x256xf32>
    %454 = arith.addf %448, %453 : vector<4x256xf32>
    %c240_i32_192 = arith.constant 240 : i32
    %455 = tpu.dynamic_rotate %412 by %c240_i32_192 dim 1 : vector<4x256xf32>, i32 -> vector<4x256xf32>
    %456 = vector.broadcast %65 : vector<1x256xf32> to vector<4x256xf32>
    %457 = arith.mulf %455, %456 : vector<4x256xf32>
    %458 = arith.truncf %457 : vector<4x256xf32> to vector<4x256xbf16>
    %cst_193 = arith.constant dense<0.000000e+00> : vector<4x256xf32>
    %459 = tpu.matmul %46, %458, %cst_193 {dimension_numbers = #tpu.dot_dimension_numbers<[1], [0], [0], [1], [0, 0, 1, 1], [], []>} : vector<4x4xbf16>, vector<4x256xbf16>, vector<4x256xf32> -> vector<4x256xf32>
    %460 = arith.addf %454, %459 : vector<4x256xf32>
    %c239_i32_194 = arith.constant 239 : i32
    %461 = tpu.dynamic_rotate %412 by %c239_i32_194 dim 1 : vector<4x256xf32>, i32 -> vector<4x256xf32>
    %462 = vector.broadcast %67 : vector<1x256xf32> to vector<4x256xf32>
    %463 = arith.mulf %461, %462 : vector<4x256xf32>
    %464 = arith.truncf %463 : vector<4x256xf32> to vector<4x256xbf16>
    %cst_195 = arith.constant dense<0.000000e+00> : vector<4x256xf32>
    %465 = tpu.matmul %49, %464, %cst_195 {dimension_numbers = #tpu.dot_dimension_numbers<[1], [0], [0], [1], [0, 0, 1, 1], [], []>} : vector<4x4xbf16>, vector<4x256xbf16>, vector<4x256xf32> -> vector<4x256xf32>
    %466 = arith.addf %460, %465 : vector<4x256xf32>
    %c4_196 = arith.constant 4 : index
    %c0_197 = arith.constant 0 : index
    %c0_198 = arith.constant 0 : index
    %467 = vector.load %arg8[%c4_196, %c0_197, %c0_198] : memref<5x4x1xf32, #tpu.memory_space<vmem>>, vector<1x4x1xf32>
    %468 = vector.shape_cast %467 : vector<1x4x1xf32> to vector<4x1xf32>
    %cst_199 = arith.constant 1.000000e+00 : f32
    %469 = vector.broadcast %cst_199 : f32 to vector<4x1xf32>
    %470 = arith.addf %469, %16 : vector<4x1xf32>
    %471 = vector.broadcast %470 : vector<4x1xf32> to vector<4x256xf32>
    %472 = arith.mulf %466, %471 : vector<4x256xf32>
    %473 = vector.broadcast %468 : vector<4x1xf32> to vector<4x256xf32>
    %474 = arith.addf %472, %473 : vector<4x256xf32>
    %cst_200 = arith.constant 1.000000e+00 : f32
    %475 = vector.broadcast %cst_200 : f32 to vector<4x1xf32>
    %476 = arith.addf %475, %21 : vector<4x1xf32>
    %477 = vector.broadcast %476 : vector<4x1xf32> to vector<4x256xf32>
    %478 = arith.mulf %466, %477 : vector<4x256xf32>
    %479 = vector.broadcast %468 : vector<4x1xf32> to vector<4x256xf32>
    %480 = arith.addf %478, %479 : vector<4x256xf32>
    %481 = arith.subf %480, %474 : vector<4x256xf32>
    %482 = vector.broadcast %22 : f32 to vector<4x256xf32>
    %483 = arith.mulf %482, %481 : vector<4x256xf32>
    %484 = arith.addf %474, %483 : vector<4x256xf32>
    %c4_201 = arith.constant 4 : index
    %c0_202 = arith.constant 0 : index
    %485 = memref.load %arg1[%c4_201, %c0_202] : memref<5x8xf32, #tpu.memory_space<smem>>
    %c4_203 = arith.constant 4 : index
    %c1_204 = arith.constant 1 : index
    %486 = memref.load %arg1[%c4_203, %c1_204] : memref<5x8xf32, #tpu.memory_space<smem>>
    %c4_205 = arith.constant 4 : index
    %c2_206 = arith.constant 2 : index
    %487 = memref.load %arg1[%c4_205, %c2_206] : memref<5x8xf32, #tpu.memory_space<smem>>
    %c4_207 = arith.constant 4 : index
    %c3_208 = arith.constant 3 : index
    %488 = memref.load %arg1[%c4_207, %c3_208] : memref<5x8xf32, #tpu.memory_space<smem>>
    %489 = vector.broadcast %486 : f32 to vector<4x256xf32>
    %490 = arith.mulf %489, %484 : vector<4x256xf32>
    %491 = arith.subf %412, %490 : vector<4x256xf32>
    %492 = vector.broadcast %485 : f32 to vector<4x256xf32>
    %493 = arith.mulf %491, %492 : vector<4x256xf32>
    %494 = vector.broadcast %487 : f32 to vector<4x256xf32>
    %495 = arith.mulf %494, %493 : vector<4x256xf32>
    %496 = vector.broadcast %488 : f32 to vector<4x256xf32>
    %497 = arith.mulf %496, %484 : vector<4x256xf32>
    %498 = arith.addf %495, %497 : vector<4x256xf32>
    %cst_209 = arith.constant 5.4899807 : f32
    %499 = vector.broadcast %cst_209 : f32 to vector<4x256xf32>
    %500 = arith.mulf %498, %499 : vector<4x256xf32>
    %c0_210 = arith.constant 0 : index
    %c0_211 = arith.constant 0 : index
    %501 = vector.load %arg9[%c0_210, %c0_211] : memref<3x4xf32, #tpu.memory_space<vmem>>, vector<3x4xf32>
    %502 = arith.truncf %501 : vector<3x4xf32> to vector<3x4xbf16>
    %503 = arith.truncf %500 : vector<4x256xf32> to vector<4x256xbf16>
    %cst_212 = arith.constant dense<0.000000e+00> : vector<3x256xf32>
    %504 = tpu.matmul %502, %503, %cst_212 {dimension_numbers = #tpu.dot_dimension_numbers<[1], [0], [0], [1], [0, 0, 1, 1], [], []>} : vector<3x4xbf16>, vector<4x256xbf16>, vector<3x256xf32> -> vector<3x256xf32>
    %c0_213 = arith.constant 0 : index
    %c0_214 = arith.constant 0 : index
    %505 = vector.load %arg10[%c0_213, %c0_214] : memref<3x1xf32, #tpu.memory_space<vmem>>, vector<3x1xf32>
    %506 = vector.broadcast %505 : vector<3x1xf32> to vector<3x256xf32>
    %507 = arith.addf %504, %506 : vector<3x256xf32>
    %cst_215 = arith.constant 5.000000e-01 : f32
    %508 = vector.broadcast %cst_215 : f32 to vector<3x256xf32>
    %509 = arith.mulf %507, %508 : vector<3x256xf32>
    %cst_216 = arith.constant 5.000000e-01 : f32
    %510 = vector.broadcast %cst_216 : f32 to vector<3x256xf32>
    %511 = arith.addf %509, %510 : vector<3x256xf32>
    %cst_217 = arith.constant 0.000000e+00 : f32
    %cst_218 = arith.constant 1.000000e+00 : f32
    %512 = vector.broadcast %cst_217 : f32 to vector<3x256xf32>
    %513 = arith.maximumf %512, %511 : vector<3x256xf32>
    %514 = vector.broadcast %cst_218 : f32 to vector<3x256xf32>
    %515 = arith.minimumf %514, %513 : vector<3x256xf32>
    %c0_219 = arith.constant 0 : index
    %c0_220 = arith.constant 0 : index
    %516 = vector.load %arg12[%c0_219, %c0_220] : memref<3x256xf32, #tpu.memory_space<vmem>>, vector<3x256xf32>
    tpu.vector_store %arg12[%c0_219, %c0_220], %515 {strides = array<i32>} : memref<3x256xf32, #tpu.memory_space<vmem>>, vector<3x256xf32>,
    return
  }
  func.func @transform_0(%arg0: i32) -> (i32, i32) {
    %c0_i32 = arith.constant 0 : i32
    %c0_i32_0 = arith.constant 0 : i32
    %c0_i32_1 = arith.constant 0 : i32
    return %c0_i32, %c0_i32_0 : i32, i32
  }
  func.func @transform_1(%arg0: i32) -> (i32, i32) {
    %c0_i32 = arith.constant 0 : i32
    %c0_i32_0 = arith.constant 0 : i32
    %c0_i32_1 = arith.constant 0 : i32
    return %c0_i32, %c0_i32_0 : i32, i32
  }
  func.func @transform_2(%arg0: i32) -> (i32, i32) {
    %c0_i32 = arith.constant 0 : i32
    %c0_i32_0 = arith.constant 0 : i32
    %c0_i32_1 = arith.constant 0 : i32
    return %c0_i32, %c0_i32_0 : i32, i32
  }
  func.func @transform_3(%arg0: i32) -> (i32, i32) {
    %c0_i32 = arith.constant 0 : i32
    %c0_i32_0 = arith.constant 0 : i32
    %c0_i32_1 = arith.constant 0 : i32
    return %c0_i32, %c0_i32_0 : i32, i32
  }
  func.func @transform_4(%arg0: i32) -> (i32, i32) {
    %c0_i32 = arith.constant 0 : i32
    %c0_i32_0 = arith.constant 0 : i32
    %c0_i32_1 = arith.constant 0 : i32
    return %c0_i32, %c0_i32_0 : i32, i32
  }
  func.func @transform_5(%arg0: i32) -> (i32, i32, i32) {
    %c0_i32 = arith.constant 0 : i32
    %c0_i32_0 = arith.constant 0 : i32
    %c0_i32_1 = arith.constant 0 : i32
    %c0_i32_2 = arith.constant 0 : i32
    return %c0_i32, %c0_i32_0, %c0_i32_1 : i32, i32, i32
  }
  func.func @transform_6(%arg0: i32) -> (i32, i32, i32) {
    %c0_i32 = arith.constant 0 : i32
    %c0_i32_0 = arith.constant 0 : i32
    %c0_i32_1 = arith.constant 0 : i32
    %c0_i32_2 = arith.constant 0 : i32
    return %c0_i32, %c0_i32_0, %c0_i32_1 : i32, i32, i32
  }
  func.func @transform_7(%arg0: i32) -> (i32, i32, i32) {
    %c0_i32 = arith.constant 0 : i32
    %c0_i32_0 = arith.constant 0 : i32
    %c0_i32_1 = arith.constant 0 : i32
    %c0_i32_2 = arith.constant 0 : i32
    return %c0_i32, %c0_i32_0, %c0_i32_1 : i32, i32, i32
  }
  func.func @transform_8(%arg0: i32) -> (i32, i32) {
    %c0_i32 = arith.constant 0 : i32
    %c0_i32_0 = arith.constant 0 : i32
    %c0_i32_1 = arith.constant 0 : i32
    return %c0_i32, %c0_i32_0 : i32, i32
  }
  func.func @transform_9(%arg0: i32) -> (i32, i32) {
    %c0_i32 = arith.constant 0 : i32
    %c0_i32_0 = arith.constant 0 : i32
    %c0_i32_1 = arith.constant 0 : i32
    return %c0_i32, %c0_i32_0 : i32, i32
  }
  func.func @transform_10(%arg0: i32) -> (i32, i32) {
    %c0_i32 = arith.constant 0 : i32
    %c0_i32_0 = arith.constant 0 : i32
    %c0_i32_1 = arith.constant 0 : i32
    return %c0_i32, %c0_i32_0 : i32, i32
  }
  func.func @transform_11(%arg0: i32) -> (i32, i32) {
    %c0_i32 = arith.constant 0 : i32
    %c0_i32_0 = arith.constant 0 : i32
    %c0_i32_1 = arith.constant 0 : i32
    return %c0_i32, %c0_i32_0 : i32, i32
  }
}

</mosaic_0001>

<bundles_post_ra>
// kernel: forward.1
= control target key start
LH: loop header
LB: loop body
LE: loop exit
PB: predicated region body
PF: predicated region fallthrough
CT: control target
= control target key end

     0   :  { %16 = vsyncpa [#allocation3], 0  ;;  %s4635_s0 = inlined_call_operand.vmem [shape: f32[5,8], index: 0, kind: input, shape index: {}]   ;;  %s4636_s1 = inlined_call_operand.vmem [shape: f32[32,16], index: 1, kind: input, shape index: {}]   ;;  %s4637_s2 = inlined_call_operand.vmem [shape: f32[32,32], index: 2, kind: input, shape index: {}]   ;;  %s4638_s3 = inlined_call_operand.vmem [shape: f32[32,1], index: 3, kind: input, shape index: {}]   ;;  %s4639_s4 = inlined_call_operand.vmem [shape: f32[4,32], index: 4, kind: input, shape index: {}]   ;;  %s4640_s5 = inlined_call_operand.vmem [shape: f32[9,4,4], index: 5, kind: input, shape index: {}]   ;;  %s4641_s6 = inlined_call_operand.vmem [shape: f32[9,1,256], index: 6, kind: input, shape index: {}]   ;;  %s4642_s7 = inlined_call_operand.vmem [shape: f32[5,4,1], index: 7, kind: input, shape index: {}]   ;;  %s4643_s8 = inlined_call_operand.vmem [shape: f32[3,4], index: 8, kind: input, shape index: {}]   ;;  %s4644_s9 = inlined_call_operand.vmem [shape: f32[3,1], index: 9, kind: input, shape index: {}]   ;;  %s4645_s10 = inlined_call_operand.vmem [shape: f32[4,256], index: 10, kind: input, shape index: {}]   ;;  %s4646_s11 = inlined_call_operand.vmem [shape: f32[3,256], index: 11, kind: output, shape index: {}]  }
   0x1   :  { %s23_s19 = sshll.u32 %s4635_s0, 4  ;;  %s24_s19 = int_to_ptr.vmem [resolvable:$true] %s23_s19 }
   0x2   :  { %s3659_s20 = scalar_lea.vmem %s24_s19, 128  ;;  %p3664_p1 = scmp.lt.s32.totalorder %s24_s19, %s24_s19 }
   0x3   :  { %p3660_p0 = scmp.ne.s32.totalorder %s24_s19, %s3659_s20  ;;  %p3665_p2 = scmp.lt.s32.totalorder %s3659_s20, %s3659_s20 }
   0x5   :  { %p3666_p3 = por %p3665_p2, %p3664_p1 }
   0x7   :  { %p3667_p4 = pnand %p3666_p3, %p3660_p0 }
   0x9   :  { %3670 = shalt.err (!%p3667_p4)
}
   0xa   :  { %s3673_s21 = smov [#allocation2]  }
   0xb   :  { %26 = dma.vmem_to_smem %s24_s19, 128, %s3673_s21, [#allocation3]  }
   0xc   :  { %3671 = dma.done.wait [#allocation3], 128  }
   0xd   :  { %3672 = vsyncadd [#allocation3], 4294967168 }
   0xe   :  { %50 = sfence }
   0xf   :  { %v58_v0 = vld [vmem:[%s4636_s1] sm:$0xff]  ;;  %v59_v1 = vld [vmem:[%s4636_s1 + $0x8] sm:$0xff]  ;;  %v60_v2 = vld [vmem:[%s4636_s1 + $0x10] sm:$0xff]  ;;  %vm88_vm0 = vcmask 261120   ;;  %v3674_v7 = vmov 0   ;;  %v3678_v19 = vmov 0.0   ;;  %v257_v20 = vlaneseq }
  0x10   :  { %v62_v3 = vpack.c.bf16 %v59_v1, %v58_v0  ;;  %v61_v4 = vld [vmem:[%s4636_s1 + $0x18] sm:$0xff]  ;;  %v52_v5 = vld [vmem:[%s4637_s2] sm:$0xff]  ;;  %v53_v6 = vld [vmem:[%s4637_s2 + $0x8] sm:$0xff]  ;;  %3656 = vset.pattern.permute.xlu0 %v3674_v7  ;;  %3657 = vset.pattern.permute.xlu1 %v3674_v7  ;;  %s3679_s26 = smov 113   ;;  %vm3680_vm1 = vmmov 0   ;;  %s3681_s27 = smov 17  }
  0x11   :  { %v63_v8 = vpack.c.bf16 %v61_v4, %v60_v2  ;;  %v56_v9 = vpack.c.bf16 %v53_v6, %v52_v5  ;;  %v64_v10 = vld [vmem:[%s4638_s3] sm:$0xff]  ;;  %538 = vmatprep.mubr.bf16.mxu0 %v3674_v7  ;;  %v66_v11 = vld [vmem:[%s4638_s3 + $0x10] sm:$0xff]  ;;  %v55_v13 = vld [vmem:[%s4637_s2 + $0x18] sm:$0xff]  ;;  %s3682_s28 = smov 112   ;;  %s3683_s29 = smov 15   ;;  %v264_v21 = vshrl.u32 %v257_v20, 7 }
  0x12   :  { %3469 = vmatprep.subr.bf16.mxu1 %v62_v3  ;;  %70 = vperm.xlu0 %3656, %v64_v10   ;;  %v54_v12 = vld [vmem:[%s4637_s2 + $0x10] sm:$0xff]  ;;  %v65_v14 = vld [vmem:[%s4638_s3 + $0x8] sm:$0xff]  ;;  %v67_v15 = vld [vmem:[%s4638_s3 + $0x18] sm:$0xff]  ;;  %s3675_s2 = smov 1   ;;  %s3676_s3 = smov 127   ;;  %v3840_v31 = vand.u32 127, %v257_v20 }
  0x13   :  { %3470 = vmatpush3.bf16.msra.mxu1 %v62_v3  ;;  %3473 = vmatprep.mubr.msk.bf16.mxu1 %vm88_vm0, %v56_v9  ;;  %v3792_v16 = vld [vmem:[%s4645_s10] sm:$0xff]  ;;  %v57_v17 = vpack.c.bf16 %v55_v13, %v54_v12  ;;  %s3677_s10 = smov 16   ;;  %s3684_s30 = smov 111   ;;  %v3342_v22 = vld [vmem:[%s4641_s6 + $0x8] sm:$0x3]  ;;  %v3826_v23 = vsub.s32 0, %v264_v21 }
  0x14   :  { %3471 = vmatprep.subr.bf16.mxu1 %v63_v8  ;;  %80 = vperm.xlu1 %3657, %v66_v11   ;;  %v251_v18 = vcombine.high %v3792_v16, %v3792_v16  ;;  %v3828_v24 = vsub.s32 1, %v264_v21  ;;  %v3341_v32 = vld [vmem:[%s4641_s6 + $0x6] sm:$0x3]  ;;  %vm479_vm2 = vcmp.lt.s32.totalorder %v3840_v31, 1  ;;  %v3343_v38 = vld [vmem:[%s4641_s6 + $0xa] sm:$0x3] }
  0x15   :  { %v553_v25 = vrot.slane %v3342_v22, %v3826_v23  ;;  %v3851_v35 = vrot.slane %v3341_v32, %v3826_v23  ;;  %vm622_vm3 = vcmp.lt.s32.totalorder %v3840_v31, 127  ;;  %vm303_vm4 = vcmask 1041408   ;;  %v3333_v47 = vld [vmem:[%s4640_s5 + $0xc] sm:$0xf]  ;;  %v3334_v62 = vld [vmem:[%s4640_s5 + $0x10] sm:$0xf] }
  0x16   :  { %75 = vperm.xlu0 %3656, %v65_v14   ;;  %v557_v26 = vrot.slane %v3342_v22, %v3828_v24  ;;  %v3854_v37 = vrot.slane %v3341_v32, %v3828_v24  ;;  %v3867_v45 = vrot.slane %v3343_v38, %v3828_v24  ;;  %v3876_v55 = vpack.c.bf16 %v3333_v47, %v3333_v47  ;;  %v3335_v2 = vld [vmem:[%s4640_s5 + $0x14] sm:$0xf]  ;;  %v3344_v4 = vld [vmem:[%s4641_s6 + $0xc] sm:$0x3]  ;;  %v3339_v10 = vld [vmem:[%s4641_s6 + $0x2] sm:$0x3] }
  0x17   :  { %3472 = vmatpush3.bf16.msra.mxu1 %v63_v8  ;;  %vm299_vm5 = vcmask 31744   ;;  %v3882_v58 = vrot.slane %v3343_v38, %v3826_v23  ;;  %v3894_v0 = vpack.c.bf16 %v3334_v62, %v3334_v62  ;;  %v3903_v3 = vpack.c.bf16 %v3335_v2, %v3335_v2  ;;  %v3336_v22 = vld [vmem:[%s4640_s5 + $0x18] sm:$0xf]  ;;  %s3685_s1 = smov 120   ;;  %s3330_s17 = sld [smem:[#allocation2 + $0x4]] }
  0x18   :  { %85 = vperm.xlu1 %3657, %v67_v15   ;;  %3477 = vmatprep.subr.bf16.mxu1 %v3678_v19  ;;  %v3836_v29 = vcombine.low %v553_v25, %v557_v26  ;;  %vm696_vm6 = vcmp.lt.s32.totalorder %v3840_v31, 113  ;;  %v3913_v8 = vrot.slane %v3344_v4, %v3826_v23  ;;  %v3916_v9 = vrot.slane %v3344_v4, %v3828_v24  ;;  %s3365_s18 = sld [smem:[#allocation2 + $0x1]]  ;;  %s3367_s19 = sld [smem:[#allocation2 + $0x3]] }
  0x19   :  { %vm281_vm7 = vcmp.lt.s32.totalorder %v3840_v31, 16  ;;  %v3932_v21 = vrot.slane %v3339_v10, %v3826_v23  ;;  %v3938_v26 = vrot.slane %v3339_v10, %v3828_v24  ;;  %vm259_vm8 = vcmp.lt.s32.totalorder %v3840_v31, 17  ;;  %v3346_v10 = vld [vmem:[%s4641_s6 + $0x10] sm:$0x3]  ;;  %s3366_s20 = sld [smem:[#allocation2 + $0x2]]  ;;  %s3388_s23 = sld [smem:[#allocation2 + $0x81]] }
  0x1a   :  { %3474 = vmatmul.mubr.msk.bf16.vlgmr.msra.gmra.mrb[0].mxu1 %vm88_vm0, %v57_v17  ;;  %475 = vrot.lane.b32.xlu0 %v3792_v16, %s3675_s2  ;;  %v560_v34 = vmul.f32 %v3836_v29, %v3792_v16  ;;  %vm770_vm9 = vcmp.lt.s32.totalorder %v3840_v31, 112  ;;  %vm405_vm10 = vcmp.lt.s32.totalorder %v3840_v31, 15  ;;  %vm844_vm11 = vcmp.lt.s32.totalorder %v3840_v31, 111  ;;  %s3387_s24 = sld [smem:[#allocation2 + $0x80]]  ;;  %s3389_s25 = sld [smem:[#allocation2 + $0x82]] }
  0x1b   :  { %3481 = vmatprep.mubr.msk.bf16.mxu1 %vm3680_vm1, %v3678_v19  ;;  %vm191_vm12 = vcmask 60416   ;;  %s3411_s13 = sld [smem:[#allocation2 + $0x101]]  ;;  %s3413_s14 = sld [smem:[#allocation2 + $0x103]] }
  0x1c   :  { %477 = vrot.lane.b32.xlu1 %v251_v18, %s3675_s2  ;;  %v562_v40 = vcombine.high %v560_v34, %v560_v34  ;;  %v564_v51 = vpack.c.bf16 %v560_v34, %v560_v34  ;;  %s3410_s15 = sld [smem:[#allocation2 + $0x100]] }
  0x1e   :  { %618 = vrot.lane.b32.xlu0 %v3792_v16, %s3676_s3  ;;  %v565_v50 = vpack.c.bf16 %v562_v40, %v562_v40  ;;  %v570_v57 = vsel %vm303_vm4, %v564_v51, 0 }
  0x20   :  { %620 = vrot.lane.b32.xlu1 %v251_v18, %s3676_s3 }
  0x22   :  { %277 = vrot.lane.b32.xlu0 %v3792_v16, %s3677_s10 }
  0x24   :  { %279 = vrot.lane.b32.xlu1 %v251_v18, %s3677_s10 }
  0x26   :  { %692 = vrot.lane.b32.xlu0 %v3792_v16, %s3679_s26 }
  0x28   :  { %694 = vrot.lane.b32.xlu1 %v251_v18, %s3679_s26 }
  0x2a   :  { %253 = vrot.lane.b32.xlu0 %v3792_v16, %s3681_s27 }
  0x2c   :  { %255 = vrot.lane.b32.xlu1 %v251_v18, %s3681_s27 }
  0x2e   :  { %766 = vrot.lane.b32.xlu0 %v3792_v16, %s3682_s28 }
  0x30   :  { %768 = vrot.lane.b32.xlu1 %v251_v18, %s3682_s28 }
  0x32   :  { %401 = vrot.lane.b32.xlu0 %v3792_v16, %s3683_s29 }
  0x34   :  { %403 = vrot.lane.b32.xlu1 %v251_v18, %s3683_s29 }
  0x36   :  { %840 = vrot.lane.b32.xlu0 %v3792_v16, %s3684_s30 }
  0x38   :  { %842 = vrot.lane.b32.xlu1 %v251_v18, %s3684_s30  ;;  %v232_v18 = vld [vmem:[%s4641_s6] sm:$0x3] }
  0x91   :  { %v3832_v27 = vpop.permute.xlu0 %70 }
  0x93   :  { %v3834_v28 = vpop.permute.xlu1 %80 }
  0x95   :  { %v3838_v30 = vpop.permute.xlu0 %75 }
  0x97   :  { %v3845_v33 = vpop.permute.xlu1 %85 }
  0x99   :  { %v476_v36 = vpop.permute.xlu0 %475 }
  0x9b   :  { %v478_v39 = vpop.permute.xlu1 %477 }
  0x9c   :  { %v480_v41 = vsel %vm479_vm2, %v476_v36, %v478_v39  ;;  %v481_v42 = vsel %vm479_vm2, %v478_v39, %v476_v36 }
  0x9d   :  { %v493_v43 = vmul.f32 %v3851_v35, %v481_v42  ;;  %v494_v44 = vmul.f32 %v3854_v37, %v480_v41  ;;  %v619_v46 = vpop.permute.xlu0 %618  ;;  %v3946_v41 = vrot.slane %v232_v18, %v3828_v24  ;;  %v3345_v42 = vld [vmem:[%s4641_s6 + $0xe] sm:$0x3] }
  0x9f   :  { %v496_v48 = vpack.c.bf16 %v494_v44, %v494_v44  ;;  %v495_v49 = vpack.c.bf16 %v493_v43, %v493_v43  ;;  %v621_v52 = vpop.permute.xlu1 %620 }
  0xa0   :  { %v624_v53 = vsel %vm622_vm3, %v621_v52, %v619_v46  ;;  %v623_v60 = vsel %vm622_vm3, %v619_v46, %v621_v52 }
  0xa1   :  { %3353 = vmatprep.subr.msk.bf16.mxu0 %vm303_vm4, %v496_v48  ;;  %v501_v54 = vsel %vm303_vm4, %v495_v49, 0  ;;  %v637_v56 = vmul.f32 %v3867_v45, %v624_v53  ;;  %v636_v61 = vmul.f32 %v3882_v58, %v623_v60  ;;  %v278_v6 = vpop.permute.xlu0 %277  ;;  %v3955_v49 = vpack.c.bf16 %v3336_v22, %v3336_v22  ;;  %v144_v60 = vld [vmem:[%s4639_s4] sm:$0xf]  ;;  %s937_s4 = sld [smem:[#allocation2]] }
  0xa2   :  { %507 = vmatpush1.bf16.msra.mxu0 %v501_v54  ;;  %v3963_v53 = vrot.slane %v3345_v42, %v3826_v23  ;;  %v3966_v54 = vrot.slane %v3345_v42, %v3828_v24  ;;  %v4007_v22 = vrot.slane %v3346_v10, %v3828_v24  ;;  %v3331_v42 = vld [vmem:[%s4640_s5 + $0x4] sm:$0xf] }
  0xa3   :  { %3355 = vmatprep.subr.msk.bf16.mxu0 %vm303_vm4, %v565_v50  ;;  %v639_v59 = vpack.c.bf16 %v637_v56, %v637_v56  ;;  %v638_v63 = vpack.c.bf16 %v636_v61, %v636_v61  ;;  %v280_v5 = vpop.permute.xlu1 %279 }
  0xa4   :  { %v283_v32 = vsel %vm281_vm7, %v280_v5, %v278_v6  ;;  %v282_v39 = vsel %vm281_vm7, %v278_v6, %v280_v5  ;;  %v3340_v6 = vld [vmem:[%s4641_s6 + $0x4] sm:$0x3]  ;;  %s3390_s6 = sld [smem:[#allocation2 + $0x83]] }
  0xa5   :  { %3354 = vmatmul.mubr.msk.bf16.vlgmr.msra.gmra.mrb[0].mxu0 %vm299_vm5, %v3876_v55  ;;  %v644_v1 = vsel %vm303_vm4, %v638_v63, 0  ;;  %v693_v12 = vpop.permute.xlu0 %692  ;;  %v295_v52 = vmul.f32 %v3932_v21, %v283_v32 }
  0xa6   :  { %576 = vmatpush1.bf16.msra.mxu0 %v570_v57  ;;  %607 = vmatprep.mubr.bf16.mxu0 %v3674_v7 }
  0xa7   :  { %3357 = vmatprep.subr.msk.bf16.mxu0 %vm303_vm4, %v639_v59  ;;  %v695_v11 = vpop.permute.xlu1 %694  ;;  %v297_v61 = vpack.c.bf16 %v295_v52, %v295_v52 }
  0xa8   :  { %v697_v13 = vsel %vm696_vm6, %v693_v12, %v695_v11  ;;  %v698_v14 = vsel %vm696_vm6, %v695_v11, %v693_v12 }
  0xa9   :  { %v710_v15 = vmul.f32 %v3913_v8, %v697_v13  ;;  %v711_v17 = vmul.f32 %v3916_v9, %v698_v14  ;;  %v254_v48 = vpop.permute.xlu0 %253 }
  0xab   :  { %v712_v34 = vpack.c.bf16 %v710_v15, %v710_v15  ;;  %v713_v36 = vpack.c.bf16 %v711_v17, %v711_v17  ;;  %v256_v40 = vpop.permute.xlu1 %255  ;;  %v3997_v17 = vrot.slane %v3340_v6, %v3828_v24 }
  0xac   :  { %v261_v11 = vsel %vm259_vm8, %v256_v40, %v254_v48 }
  0xad   :  { %v718_v47 = vsel %vm303_vm4, %v712_v34, 0  ;;  %v767_v59 = vpop.permute.xlu0 %766 }
  0xaf   :  { %v769_v57 = vpop.permute.xlu1 %768 }
  0xb0   :  { %v771_v62 = vsel %vm770_vm9, %v767_v59, %v769_v57  ;;  %v772_v63 = vsel %vm770_vm9, %v769_v57, %v767_v59 }
  0xb1   :  { %3356 = vmatmul.mubr.msk.bf16.vlgmr.msra.gmra.mrb[0].mxu0 %vm299_vm5, %v3894_v0  ;;  %v784_v4 = vmul.f32 %v3963_v53, %v771_v62  ;;  %v785_v5 = vmul.f32 %v3966_v54, %v772_v63  ;;  %v402_v15 = vpop.permute.xlu0 %401  ;;  %v206_v62 = vld [vmem:[%s4640_s5] sm:$0xf] }
  0xb2   :  { %650 = vmatpush1.bf16.msra.mxu0 %v644_v1  ;;  %681 = vmatprep.mubr.bf16.mxu0 %v3674_v7 }
  0xb3   :  { %3359 = vmatprep.subr.msk.bf16.mxu0 %vm303_vm4, %v713_v36  ;;  %v404_v12 = vpop.permute.xlu1 %403  ;;  %v786_v13 = vpack.c.bf16 %v784_v4, %v784_v4  ;;  %v787_v14 = vpack.c.bf16 %v785_v5, %v785_v5  ;;  %v3332_v4 = vld [vmem:[%s4640_s5 + $0x8] sm:$0xf] }
  0xb4   :  { %v407_v59 = vsel %vm405_vm10, %v404_v12, %v402_v15  ;;  %v4069_v5 = vpack.c.bf16 %v3332_v4, %v3332_v4 }
  0xb5   :  { %v792_v36 = vsel %vm303_vm4, %v786_v13, 0 }
  0xbd   :  { %3358 = vmatmul.mubr.msk.bf16.vlgmr.msra.gmra.mrb[0].mxu0 %vm299_vm5, %v3903_v3 }
  0xbe   :  { %755 = vmatprep.mubr.bf16.mxu0 %v3674_v7  ;;  %724 = vmatpush1.bf16.msra.mxu0 %v718_v47 }
  0xbf   :  { %3361 = vmatprep.subr.msk.bf16.mxu0 %vm303_vm4, %v787_v14 }
  0xc9   :  { %3360 = vmatmul.mubr.msk.bf16.vlgmr.msra.gmra.mrb[0].mxu0 %vm299_vm5, %v3955_v49 }
  0xca   :  { %829 = vmatprep.mubr.bf16.mxu0 %v3674_v7  ;;  %798 = vmatpush1.bf16.msra.mxu0 %v792_v36 }
  0xed   :  { %v3475_v20 = vpop.f32.mrb[0].mxu1 }
  0xee   :  { %v129_v25 = vpop.f32.mrb[1].mxu1  ;;  %v138_v43 = vadd.f32 %v3475_v20, %v3834_v28  ;;  %v4004_v20 = vrot.slane %v3346_v10, %v3826_v23 }
  0xef   :  { %v3476_v38 = vpop.f32.mrb[2].mxu1  ;;  %v130_v50 = vadd.f32 %v129_v25, %v3832_v27  ;;  %v260_v27 = vsel %vm259_vm8, %v254_v48, %v256_v40  ;;  %v305_v25 = vsel %vm303_vm4, %v297_v61, 0  ;;  %v841_v40 = vpop.permute.xlu0 %840 }
  0xf0   :  { %v141_v44 = vadd.f32 %v3476_v38, %v3845_v33  ;;  %v132_v46 = vpop.f32.mrb[3].mxu1  ;;  %v296_v33 = vmul.f32 %v3938_v26, %v282_v39  ;;  %v274_v2 = vmul.f32 %v3946_v41, %v260_v27  ;;  %v406_v38 = vsel %vm405_vm10, %v402_v15, %v404_v12  ;;  %v843_v39 = vpop.permute.xlu1 %842 }
  0xf1   :  { %v133_v51 = vadd.f32 %v132_v46, %v3838_v30  ;;  %v3971_v30 = vrot.slane %v232_v18, %v3826_v23  ;;  %v3337_v18 = vld [vmem:[%s4640_s5 + $0x1c] sm:$0xf]  ;;  %v420_v47 = vmul.f32 %v3997_v17, %v406_v38 }
  0xf2   :  { %v147_v28 = vpack.c.bf16 %v141_v44, %v138_v43  ;;  %v298_v1 = vpack.c.bf16 %v296_v33, %v296_v33  ;;  %v276_v34 = vpack.c.bf16 %v274_v2, %v274_v2  ;;  %v4017_v24 = vpack.c.bf16 %v3337_v18, %v3337_v18 }
  0xf3   :  { %v146_v56 = vpack.c.bf16 %v133_v51, %v130_v50  ;;  %v273_v32 = vmul.f32 %v3971_v30, %v261_v11  ;;  %v845_v43 = vsel %vm844_vm11, %v841_v40, %v843_v39  ;;  %v846_v44 = vsel %vm844_vm11, %v843_v39, %v841_v40 }
  0xf4   :  { %v858_v48 = vmul.f32 %v4004_v20, %v845_v43  ;;  %v859_v50 = vmul.f32 %v4007_v22, %v846_v44  ;;  %v4031_v51 = vpack.c.bf16 %v3331_v42, %v3331_v42  ;;  %3362 = vmatmul.mubr.msk.bf16.vlgmr.msra.gmra.mrb[0].mxu0 %vm299_vm5, %v4017_v24  ;;  %v422_v27 = vpack.c.bf16 %v420_v47, %v420_v47  ;;  %v914_v43 = vld [vmem:[%s4642_s7] sm:$0xf] }
  0xf5   :  { %3478 = vmatpush3.bf16.msra.mxu1 %v146_v56  ;;  %v275_v46 = vpack.c.bf16 %v273_v32, %v273_v32  ;;  %903 = vmatprep.mubr.bf16.mxu0 %v3674_v7  ;;  %v4038_v56 = vrot.slane %v3340_v6, %v3826_v23  ;;  %v3338_v23 = vld [vmem:[%s4640_s5 + $0x20] sm:$0xf] }
  0xf6   :  { %3479 = vmatprep.subr.bf16.mxu1 %v3678_v19  ;;  %v145_v19 = vpack.c.bf16 %v144_v60, %v144_v60  ;;  %v860_v52 = vpack.c.bf16 %v858_v48, %v858_v48  ;;  %v4052_v61 = vpack.c.bf16 %v3338_v23, %v3338_v23 }
  0xf7   :  { %v355_v33 = vsel %vm303_vm4, %v275_v46, 0  ;;  %v419_v60 = vmul.f32 %v4038_v56, %v407_v59 }
  0xf8   :  { %v866_v57 = vsel %vm303_vm4, %v860_v52, 0 }
  0xf9   :  { %3480 = vmatpush3.bf16.msra.mxu1 %v147_v28  ;;  %v861_v28 = vpack.c.bf16 %v859_v50, %v859_v50  ;;  %v421_v63 = vpack.c.bf16 %v419_v60, %v419_v60 }
  0xfa   :  { %3347 = vmatprep.subr.msk.bf16.mxu1 %vm303_vm4, %v298_v1  ;;  %v4057_v1 = vpack.c.bf16 %v206_v62, %v206_v62 }
  0xfb   :  { %3363 = vmatprep.subr.msk.bf16.mxu0 %vm303_vm4, %v861_v28  ;;  %v427_v2 = vsel %vm303_vm4, %v421_v63, 0 }
  0xfc   :  { %3482 = vmatmul.mubr.msk.bf16.vlgmr.msra.gmra.mrb[4].mxu1 %vm88_vm0, %v145_v19  ;;  %872 = vmatpush1.bf16.msra.mxu0 %v866_v57 }
  0xfd   :  { %311 = vmatpush1.bf16.msra.mxu1 %v305_v25  ;;  %342 = vmatprep.mubr.bf16.mxu1 %v3674_v7 }
  0xfe   :  { %3349 = vmatprep.subr.msk.bf16.mxu1 %vm303_vm4, %v276_v34 }
 0x100   :  { %3364 = vmatmul.mubr.msk.bf16.vlgmr.msra.gmra.mrb[0].mxu0 %vm299_vm5, %v4052_v61 }
 0x101   :  { %1593 = vmatprep.mubr.bf16.mxu0 %v3674_v7 }
 0x104   :  { %3348 = vmatmul.mubr.msk.bf16.vlgmr.msra.gmra.mrb[8].mxu1 %vm299_vm5, %v4031_v51 }
 0x105   :  { %361 = vmatpush1.bf16.msra.mxu1 %v355_v33  ;;  %392 = vmatprep.mubr.bf16.mxu1 %v3674_v7 }
 0x106   :  { %3351 = vmatprep.subr.msk.bf16.mxu1 %vm303_vm4, %v422_v27 }
 0x110   :  { %3350 = vmatmul.mubr.msk.bf16.vlgmr.msra.gmra.mrb[8].mxu1 %vm299_vm5, %v4057_v1 }
 0x111   :  { %433 = vmatpush1.bf16.msra.mxu1 %v427_v2  ;;  %464 = vmatprep.mubr.bf16.mxu1 %v3674_v7  ;;  %v4087_v2 = vstv %s3330_s17  ;;  %s3434_s17 = sld [smem:[#allocation2 + $0x181]] }
 0x11c   :  { %3352 = vmatmul.mubr.msk.bf16.vlgmr.msra.gmra.mrb[8].mxu1 %vm299_vm5, %v4069_v5 }
 0x11d   :  { %1022 = vmatprep.mubr.bf16.mxu1 %v3674_v7 }
 0x1cf   :  { %v185_v6 = vpop.f32.mrb[4].mxu1 }
 0x1d0   :  { %198 = vrot.lane.b32.xlu0 %v185_v6, %s3685_s1  ;;  %v3483_v10 = vpop.f32.mrb[5].mxu1  ;;  %v192_v11 = vsel %vm191_vm12, %v185_v6, 0.0  ;;  %s3412_s1 = sld [smem:[#allocation2 + $0x102]] }
 0x1d1   :  { %193 = vadd.xlane.f32.xlu1 %v192_v11  ;;  %v188_v12 = vpop.f32.mrb[6].mxu1 }
 0x1d2   :  { %v3484_v19 = vpop.f32.mrb[7].mxu1  ;;  %v941_v12 = vstv %s3365_s18  ;;  %s3436_s18 = sld [smem:[#allocation2 + $0x183]] }
 0x1d3   :  { %v905_v13 = vpop.f32.mrb[0].mxu0  ;;  %v953_v19 = vstv %s3367_s19  ;;  %s3433_s19 = sld [smem:[#allocation2 + $0x180]] }
 0x1d4   :  { %v907_v14 = vpop.f32.mrb[1].mxu0 }
 0x1d5   :  { %v909_v15 = vpop.f32.mrb[2].mxu0 }
 0x1d6   :  { %v910_v18 = vpop.f32.mrb[3].mxu0 }
 0x1ef   :  { %v466_v25 = vpop.f32.mrb[8].mxu1 }
 0x1f0   :  { %v3485_v32 = vadd.f32 %v905_v13, %v466_v25  ;;  %v468_v34 = vpop.f32.mrb[9].mxu1 }
 0x1f1   :  { %v3486_v36 = vadd.f32 %v907_v14, %v468_v34  ;;  %v470_v38 = vpop.f32.mrb[10].mxu1 }
 0x1f2   :  { %v471_v39 = vpop.f32.mrb[11].mxu1  ;;  %v949_v38 = vstv %s937_s4  ;;  %s3435_s4 = sld [smem:[#allocation2 + $0x182]] }
 0x242   :  { %v199_v40 = vpop.permute.xlu0 %198 }
 0x243   :  { %v201_v42 = vsel %vm191_vm12, %v199_v40, 0.0  ;;  %v951_v40 = vstv %s3366_s20 }
 0x244   :  { %202 = vadd.xlane.f32.xlu0 %v201_v42 }
 0x25a   :  { %920 = vperm.xlu0 %3656, %v914_v43  }
 0x25e   :  { %v194_v44 = vpop.xlane.xlu1 %193 }
 0x25f   :  { %v196_v46 = vmul.f32 0.125, %v194_v44 }
 0x261   :  { %v4079_v50 = vadd.f32 1.0, %v196_v46 }
 0x263   :  { %v916_v28 = vmul.f32 %v3485_v32, %v4079_v50  ;;  %v917_v33 = vmul.f32 %v3486_v36, %v4079_v50 }
 0x2d1   :  { %v203_v47 = vpop.xlane.xlu0 %202 }
 0x2d2   :  { %v204_v48 = vmul.f32 0.125, %v203_v47 }
 0x2d4   :  { %v4081_v52 = vadd.f32 1.0, %v204_v48 }
 0x2d6   :  { %v926_v27 = vmul.f32 %v3485_v32, %v4081_v52  ;;  %v927_v57 = vmul.f32 %v3486_v36, %v4081_v52 }
 0x2d9   :  { %v921_v59 = vpop.permute.xlu0 %920 }
 0x2da   :  { %v923_v23 = vadd.f32 %v921_v59, %v916_v28  ;;  %v924_v60 = vadd.f32 %v921_v59, %v917_v33  ;;  %v928_v62 = vadd.f32 %v926_v27, %v921_v59  ;;  %v929_v63 = vadd.f32 %v927_v57, %v921_v59 }
 0x2dc   :  { %v930_v4 = vsub.f32 %v928_v62, %v923_v23  ;;  %v931_v6 = vsub.f32 %v929_v63, %v924_v60 }
 0x2de   :  { %v933_v10 = vmul.f32 %v4087_v2, %v930_v4  ;;  %v934_v11 = vmul.f32 %v4087_v2, %v931_v6 }
 0x2e0   :  { %v935_v13 = vadd.f32 %v933_v10, %v923_v23  ;;  %v936_v14 = vadd.f32 %v934_v11, %v924_v60 }
 0x2e2   :  { %v942_v15 = vmul.f32 %v941_v12, %v935_v13  ;;  %v943_v18 = vmul.f32 %v941_v12, %v936_v14  ;;  %v954_v25 = vmul.f32 %v953_v19, %v935_v13  ;;  %v955_v32 = vmul.f32 %v953_v19, %v936_v14 }
 0x2e4   :  { %v946_v34 = vcombine.low %v942_v15, %v943_v18  ;;  %v958_v36 = vcombine.low %v954_v25, %v955_v32 }
 0x2e6   :  { %v948_v39 = vsub.f32 %v3792_v16, %v946_v34  ;;  %v3386_v16 = vld [vmem:[%s4642_s7 + $0x4] sm:$0xf] }
 0x2e8   :  { %v950_v42 = vmul.f32 %v949_v38, %v948_v39 }
 0x2ea   :  { %v952_v43 = vmul.f32 %v951_v40, %v950_v42 }
 0x2ec   :  { %v4092_v44 = vadd.f32 %v958_v36, %v952_v43 }
 0x2ee   :  { %964 = vrot.lane.b32.xlu0 %v4092_v44, %s3681_s27  ;;  %974 = vrot.lane.b32.xlu1 %v4092_v44, %s3677_s10  ;;  %v962_v46 = vcombine.high %v4092_v44, %v4092_v44 }
 0x2f2   :  { %1078 = vrot.lane.b32.xlu0 %v4092_v44, %s3683_s29  ;;  %976 = vrot.lane.b32.xlu1 %v962_v46, %s3677_s10 }
 0x2f6   :  { %1137 = vrot.lane.b32.xlu0 %v4092_v44, %s3675_s2  ;;  %966 = vrot.lane.b32.xlu1 %v962_v46, %s3681_s27 }
 0x2fa   :  { %1251 = vrot.lane.b32.xlu0 %v4092_v44, %s3676_s3  ;;  %1080 = vrot.lane.b32.xlu1 %v962_v46, %s3683_s29 }
 0x2fe   :  { %1310 = vrot.lane.b32.xlu0 %v4092_v44, %s3679_s26  ;;  %1139 = vrot.lane.b32.xlu1 %v962_v46, %s3675_s2 }
 0x302   :  { %1369 = vrot.lane.b32.xlu0 %v4092_v44, %s3682_s28  ;;  %1253 = vrot.lane.b32.xlu1 %v962_v46, %s3676_s3 }
 0x306   :  { %1428 = vrot.lane.b32.xlu0 %v4092_v44, %s3684_s30  ;;  %1312 = vrot.lane.b32.xlu1 %v962_v46, %s3679_s26 }
 0x30a   :  { %1493 = vperm.xlu0 %3656, %v3386_v16   ;;  %1371 = vrot.lane.b32.xlu1 %v962_v46, %s3682_s28 }
 0x30e   :  { %1430 = vrot.lane.b32.xlu1 %v962_v46, %s3684_s30 }
 0x360   :  { %v975_v47 = vpop.permute.xlu1 %974  ;;  %v965_v27 = vpop.permute.xlu0 %964 }
 0x364   :  { %v977_v48 = vpop.permute.xlu1 %976  ;;  %v1079_v12 = vpop.permute.xlu0 %1078 }
 0x365   :  { %v978_v28 = vsel %vm281_vm7, %v975_v47, %v977_v48  ;;  %v979_v33 = vsel %vm281_vm7, %v977_v48, %v975_v47 }
 0x366   :  { %v980_v57 = vmul.f32 %v979_v33, %v3932_v21  ;;  %v981_v59 = vmul.f32 %v978_v28, %v3938_v26  ;;  %v1196_v28 = vmul.f32 %v4092_v44, %v3836_v29 }
 0x368   :  { %v982_v23 = vpack.c.bf16 %v980_v57, %v980_v57  ;;  %v983_v60 = vpack.c.bf16 %v981_v59, %v981_v59  ;;  %v967_v62 = vpop.permute.xlu1 %966  ;;  %v1138_v38 = vpop.permute.xlu0 %1137 }
 0x369   :  { %v968_v63 = vsel %vm259_vm8, %v965_v27, %v967_v62  ;;  %v969_v4 = vsel %vm259_vm8, %v967_v62, %v965_v27  ;;  %v1198_v27 = vcombine.high %v1196_v28, %v1196_v28 }
 0x36a   :  { %v970_v6 = vmul.f32 %v969_v4, %v3971_v30  ;;  %v971_v10 = vmul.f32 %v968_v63, %v3946_v41  ;;  %3368 = vmatprep.subr.msk.bf16.mxu1 %vm303_vm4, %v983_v60  ;;  %v985_v11 = vsel %vm303_vm4, %v982_v23, 0  ;;  %v1200_v4 = vpack.c.bf16 %v1196_v28, %v1196_v28 }
 0x36b   :  { %991 = vmatpush1.bf16.msra.mxu1 %v985_v11  ;;  %v1201_v59 = vpack.c.bf16 %v1198_v27, %v1198_v27 }
 0x36c   :  { %v972_v19 = vpack.c.bf16 %v970_v6, %v970_v6  ;;  %v973_v13 = vpack.c.bf16 %v971_v10, %v971_v10  ;;  %v1081_v14 = vpop.permute.xlu1 %1080  ;;  %v1252_v60 = vpop.permute.xlu0 %1251  ;;  %v1203_v10 = vsel %vm303_vm4, %v1200_v4, 0 }
 0x36d   :  { %v1082_v15 = vsel %vm405_vm10, %v1079_v12, %v1081_v14  ;;  %v1083_v32 = vsel %vm405_vm10, %v1081_v14, %v1079_v12 }
 0x36e   :  { %v1085_v18 = vmul.f32 %v1082_v15, %v3997_v17  ;;  %3369 = vmatmul.mubr.msk.bf16.vlgmr.msra.gmra.mrb[12].mxu1 %vm299_vm5, %v4031_v51  ;;  %3370 = vmatprep.subr.msk.bf16.mxu1 %vm303_vm4, %v973_v13  ;;  %v1032_v25 = vsel %vm303_vm4, %v972_v19, 0  ;;  %v1084_v39 = vmul.f32 %v1083_v32, %v4038_v56 }
 0x36f   :  { %1038 = vmatpush1.bf16.msra.mxu1 %v1032_v25  ;;  %1069 = vmatprep.mubr.bf16.mxu1 %v3674_v7 }
 0x370   :  { %v1087_v34 = vpack.c.bf16 %v1085_v18, %v1085_v18  ;;  %v1140_v36 = vpop.permute.xlu1 %1139  ;;  %v1086_v42 = vpack.c.bf16 %v1084_v39, %v1084_v39  ;;  %v1311_v19 = vpop.permute.xlu0 %1310 }
 0x371   :  { %v1141_v40 = vsel %vm479_vm2, %v1138_v38, %v1140_v36  ;;  %v1142_v47 = vsel %vm479_vm2, %v1140_v36, %v1138_v38 }
 0x372   :  { %3372 = vmatprep.subr.msk.bf16.mxu1 %vm303_vm4, %v1087_v34  ;;  %v1144_v43 = vmul.f32 %v1141_v40, %v3854_v37  ;;  %v1089_v16 = vsel %vm303_vm4, %v1086_v42, 0  ;;  %v1143_v48 = vmul.f32 %v1142_v47, %v3851_v35 }
 0x374   :  { %v1146_v46 = vpack.c.bf16 %v1144_v43, %v1144_v43  ;;  %v1145_v33 = vpack.c.bf16 %v1143_v48, %v1143_v48  ;;  %v1254_v23 = vpop.permute.xlu1 %1253  ;;  %v1370_v38 = vpop.permute.xlu0 %1369 }
 0x375   :  { %v1256_v62 = vsel %vm622_vm3, %v1254_v23, %v1252_v60  ;;  %v1255_v11 = vsel %vm622_vm3, %v1252_v60, %v1254_v23 }
 0x376   :  { %v1148_v57 = vsel %vm303_vm4, %v1145_v33, 0  ;;  %v1258_v63 = vmul.f32 %v1256_v62, %v3867_v45  ;;  %v1257_v13 = vmul.f32 %v1255_v11, %v3882_v58 }
 0x378   :  { %v1260_v6 = vpack.c.bf16 %v1258_v63, %v1258_v63  ;;  %v1313_v12 = vpop.permute.xlu1 %1312  ;;  %v1259_v15 = vpack.c.bf16 %v1257_v13, %v1257_v13  ;;  %v1429_v28 = vpop.permute.xlu0 %1428 }
 0x379   :  { %v1315_v14 = vsel %vm696_vm6, %v1313_v12, %v1311_v19  ;;  %v1314_v34 = vsel %vm696_vm6, %v1311_v19, %v1313_v12 }
 0x37a   :  { %3371 = vmatmul.mubr.msk.bf16.vlgmr.msra.gmra.mrb[12].mxu1 %vm299_vm5, %v4057_v1  ;;  %v1317_v18 = vmul.f32 %v1315_v14, %v3916_v9  ;;  %v1262_v32 = vsel %vm303_vm4, %v1259_v15, 0  ;;  %v1316_v39 = vmul.f32 %v1314_v34, %v3913_v8 }
 0x37b   :  { %1095 = vmatpush1.bf16.msra.mxu1 %v1089_v16  ;;  %1126 = vmatprep.mubr.bf16.mxu1 %v3674_v7 }
 0x37c   :  { %3374 = vmatprep.subr.msk.bf16.mxu1 %vm303_vm4, %v1146_v46  ;;  %v1319_v25 = vpack.c.bf16 %v1317_v18, %v1317_v18  ;;  %v1372_v36 = vpop.permute.xlu1 %1371  ;;  %v1318_v42 = vpack.c.bf16 %v1316_v39, %v1316_v39 }
 0x37d   :  { %v1374_v40 = vsel %vm770_vm9, %v1372_v36, %v1370_v38  ;;  %v1373_v47 = vsel %vm770_vm9, %v1370_v38, %v1372_v36 }
 0x37e   :  { %v1376_v43 = vmul.f32 %v1374_v40, %v3966_v54  ;;  %v1321_v16 = vsel %vm303_vm4, %v1318_v42, 0  ;;  %v1375_v33 = vmul.f32 %v1373_v47, %v3963_v53 }
 0x380   :  { %v1378_v46 = vpack.c.bf16 %v1376_v43, %v1376_v43  ;;  %v1431_v48 = vpop.permute.xlu1 %1430  ;;  %v1512_v43 = vstv %s3388_s23 }
 0x381   :  { %v1433_v27 = vsel %vm844_vm11, %v1431_v48, %v1429_v28  ;;  %v1432_v62 = vsel %vm844_vm11, %v1429_v28, %v1431_v48 }
 0x382   :  { %v1434_v63 = vmul.f32 %v1432_v62, %v4004_v20 }
 0x384   :  { %v1436_v4 = vpack.c.bf16 %v1434_v63, %v1434_v63  ;;  %v1522_v63 = vstv %s3389_s25 }
 0x386   :  { %3373 = vmatmul.mubr.msk.bf16.vlgmr.msra.gmra.mrb[12].mxu1 %vm299_vm5, %v4069_v5 }
 0x387   :  { %1154 = vmatpush1.bf16.msra.mxu1 %v1148_v57  ;;  %1185 = vmatprep.mubr.bf16.mxu1 %v3674_v7  ;;  %v1377_v57 = vpack.c.bf16 %v1375_v33, %v1375_v33 }
 0x388   :  { %3376 = vmatprep.subr.msk.bf16.mxu1 %vm303_vm4, %v1201_v59  ;;  %v1435_v59 = vmul.f32 %v1433_v27, %v4007_v22 }
 0x389   :  { %v1380_v60 = vsel %vm303_vm4, %v1377_v57, 0  ;;  %v1494_v13 = vpop.permute.xlu0 %1493 }
 0x38a   :  { %v1437_v23 = vpack.c.bf16 %v1435_v59, %v1435_v59 }
 0x392   :  { %3375 = vmatmul.mubr.msk.bf16.vlgmr.msra.gmra.mrb[12].mxu1 %vm299_vm5, %v3876_v55 }
 0x393   :  { %1209 = vmatpush1.bf16.msra.mxu1 %v1203_v10  ;;  %1240 = vmatprep.mubr.bf16.mxu1 %v3674_v7 }
 0x394   :  { %3378 = vmatprep.subr.msk.bf16.mxu1 %vm303_vm4, %v1260_v6  ;;  %v1439_v6 = vsel %vm303_vm4, %v1436_v4, 0 }
 0x39e   :  { %3377 = vmatmul.mubr.msk.bf16.vlgmr.msra.gmra.mrb[12].mxu1 %vm299_vm5, %v3894_v0 }
 0x39f   :  { %1268 = vmatpush1.bf16.msra.mxu1 %v1262_v32  ;;  %1299 = vmatprep.mubr.bf16.mxu1 %v3674_v7 }
 0x3a0   :  { %3380 = vmatprep.subr.msk.bf16.mxu1 %vm303_vm4, %v1319_v25 }
 0x3aa   :  { %3379 = vmatmul.mubr.msk.bf16.vlgmr.msra.gmra.mrb[12].mxu1 %vm299_vm5, %v3903_v3 }
 0x3ab   :  { %1327 = vmatpush1.bf16.msra.mxu1 %v1321_v16  ;;  %1358 = vmatprep.mubr.bf16.mxu1 %v3674_v7 }
 0x3ac   :  { %3382 = vmatprep.subr.msk.bf16.mxu1 %vm303_vm4, %v1378_v46  ;;  %v1524_v46 = vstv %s3390_s6 }
 0x3b6   :  { %3381 = vmatmul.mubr.msk.bf16.vlgmr.msra.gmra.mrb[12].mxu1 %vm299_vm5, %v3955_v49 }
 0x3b7   :  { %1386 = vmatpush1.bf16.msra.mxu1 %v1380_v60  ;;  %1417 = vmatprep.mubr.bf16.mxu1 %v3674_v7  ;;  %v1520_v60 = vstv %s3387_s24 }
 0x3b8   :  { %3384 = vmatprep.subr.msk.bf16.mxu1 %vm303_vm4, %v1437_v23 }
 0x3c2   :  { %3383 = vmatmul.mubr.msk.bf16.vlgmr.msra.gmra.mrb[12].mxu1 %vm299_vm5, %v4017_v24 }
 0x3c3   :  { %1445 = vmatpush1.bf16.msra.mxu1 %v1439_v6  ;;  %1476 = vmatprep.mubr.bf16.mxu1 %v3674_v7 }
 0x3ce   :  { %3385 = vmatmul.mubr.msk.bf16.vlgmr.msra.gmra.mrb[12].mxu1 %vm299_vm5, %v4052_v61 }
 0x3cf   :  { %2164 = vmatprep.mubr.bf16.mxu1 %v3674_v7 }
 0x4a1   :  { %v1478_v10 = vpop.f32.mrb[12].mxu1 }
 0x4a2   :  { %v1489_v11 = vmul.f32 %v1478_v10, %v4079_v50  ;;  %v1498_v12 = vmul.f32 %v1478_v10, %v4081_v52  ;;  %v1480_v19 = vpop.f32.mrb[13].mxu1 }
 0x4a3   :  { %v1490_v14 = vmul.f32 %v1480_v19, %v4079_v50  ;;  %v1499_v15 = vmul.f32 %v1480_v19, %v4081_v52  ;;  %v1482_v18 = vpop.f32.mrb[14].mxu1 }
 0x4a4   :  { %v1496_v25 = vadd.f32 %v1494_v13, %v1489_v11  ;;  %v1500_v32 = vadd.f32 %v1498_v12, %v1494_v13  ;;  %v1483_v34 = vpop.f32.mrb[15].mxu1 }
 0x4a5   :  { %v1497_v36 = vadd.f32 %v1494_v13, %v1490_v14  ;;  %v1501_v38 = vadd.f32 %v1499_v15, %v1494_v13 }
 0x4a6   :  { %v1502_v39 = vsub.f32 %v1500_v32, %v1496_v25 }
 0x4a7   :  { %v1503_v40 = vsub.f32 %v1501_v38, %v1497_v36 }
 0x4a8   :  { %v1504_v42 = vmul.f32 %v1502_v39, %v4087_v2 }
 0x4a9   :  { %v1505_v16 = vmul.f32 %v1503_v40, %v4087_v2 }
 0x4aa   :  { %v1506_v47 = vadd.f32 %v1504_v42, %v1496_v25 }
 0x4ab   :  { %v1507_v48 = vadd.f32 %v1505_v16, %v1497_v36 }
 0x4ac   :  { %v1513_v28 = vmul.f32 %v1512_v43, %v1506_v47  ;;  %v1525_v33 = vmul.f32 %v1524_v46, %v1506_v47 }
 0x4ad   :  { %v1514_v27 = vmul.f32 %v1512_v43, %v1507_v48  ;;  %v1526_v57 = vmul.f32 %v1524_v46, %v1507_v48 }
 0x4af   :  { %v1517_v59 = vcombine.low %v1513_v28, %v1514_v27  ;;  %v1529_v23 = vcombine.low %v1525_v33, %v1526_v57 }
 0x4b1   :  { %v1519_v62 = vsub.f32 %v4092_v44, %v1517_v59  ;;  %v3409_v44 = vld [vmem:[%s4642_s7 + $0x8] sm:$0xf] }
 0x4b3   :  { %v1521_v4 = vmul.f32 %v1520_v60, %v1519_v62 }
 0x4b5   :  { %v1523_v6 = vmul.f32 %v1522_v63, %v1521_v4 }
 0x4b7   :  { %v4225_v10 = vadd.f32 %v1529_v23, %v1523_v6 }
 0x4b9   :  { %1545 = vrot.lane.b32.xlu1 %v4225_v10, %s3677_s10  ;;  %v1533_v11 = vcombine.high %v4225_v10, %v4225_v10 }
 0x4bb   :  { %1547 = vrot.lane.b32.xlu0 %v1533_v11, %s3677_s10 }
 0x4bd   :  { %1535 = vrot.lane.b32.xlu1 %v4225_v10, %s3681_s27 }
 0x4bf   :  { %1537 = vrot.lane.b32.xlu0 %v1533_v11, %s3681_s27 }
 0x4c1   :  { %1649 = vrot.lane.b32.xlu1 %v4225_v10, %s3683_s29 }
 0x4c3   :  { %1651 = vrot.lane.b32.xlu0 %v1533_v11, %s3683_s29 }
 0x4c5   :  { %1708 = vrot.lane.b32.xlu1 %v4225_v10, %s3675_s2 }
 0x4c7   :  { %1710 = vrot.lane.b32.xlu0 %v1533_v11, %s3675_s2 }
 0x4c9   :  { %1822 = vrot.lane.b32.xlu1 %v4225_v10, %s3676_s3 }
 0x4cb   :  { %1824 = vrot.lane.b32.xlu0 %v1533_v11, %s3676_s3 }
 0x4cd   :  { %1881 = vrot.lane.b32.xlu1 %v4225_v10, %s3679_s26 }
 0x4cf   :  { %1883 = vrot.lane.b32.xlu0 %v1533_v11, %s3679_s26 }
 0x4d1   :  { %1940 = vrot.lane.b32.xlu1 %v4225_v10, %s3682_s28 }
 0x4d3   :  { %1942 = vrot.lane.b32.xlu0 %v1533_v11, %s3682_s28 }
 0x4d5   :  { %1999 = vrot.lane.b32.xlu1 %v4225_v10, %s3684_s30 }
 0x4d7   :  { %2001 = vrot.lane.b32.xlu0 %v1533_v11, %s3684_s30 }
 0x4d9   :  { %2064 = vperm.xlu1 %3657, %v3409_v44  }
 0x52b   :  { %v1546_v12 = vpop.permute.xlu1 %1545 }
 0x52d   :  { %v1548_v19 = vpop.permute.xlu0 %1547 }
 0x52e   :  { %v1549_v13 = vsel %vm281_vm7, %v1546_v12, %v1548_v19  ;;  %v1550_v14 = vsel %vm281_vm7, %v1548_v19, %v1546_v12 }
 0x52f   :  { %v1551_v15 = vmul.f32 %v1550_v14, %v3932_v21  ;;  %v1552_v18 = vmul.f32 %v1549_v13, %v3938_v26  ;;  %v1536_v25 = vpop.permute.xlu1 %1535  ;;  %v1767_v13 = vmul.f32 %v4225_v10, %v3836_v29 }
 0x531   :  { %v1553_v32 = vpack.c.bf16 %v1551_v15, %v1551_v15  ;;  %v1554_v34 = vpack.c.bf16 %v1552_v18, %v1552_v18  ;;  %v1538_v36 = vpop.permute.xlu0 %1537  ;;  %v1769_v15 = vcombine.high %v1767_v13, %v1767_v13 }
 0x532   :  { %v1539_v38 = vsel %vm259_vm8, %v1536_v25, %v1538_v36  ;;  %v1540_v39 = vsel %vm259_vm8, %v1538_v36, %v1536_v25 }
 0x533   :  { %v1541_v40 = vmul.f32 %v1540_v39, %v3971_v30  ;;  %v1542_v42 = vmul.f32 %v1539_v38, %v3946_v41  ;;  %3391 = vmatprep.subr.msk.bf16.mxu0 %vm303_vm4, %v1554_v34  ;;  %v1556_v43 = vsel %vm303_vm4, %v1553_v32, 0  ;;  %v1650_v47 = vpop.permute.xlu1 %1649  ;;  %v1772_v25 = vpack.c.bf16 %v1769_v15, %v1769_v15 }
 0x534   :  { %1562 = vmatpush1.bf16.msra.mxu0 %v1556_v43  ;;  %v1771_v39 = vpack.c.bf16 %v1767_v13, %v1767_v13 }
 0x535   :  { %v1543_v46 = vpack.c.bf16 %v1541_v40, %v1541_v40  ;;  %v1544_v16 = vpack.c.bf16 %v1542_v42, %v1542_v42  ;;  %v1652_v48 = vpop.permute.xlu0 %1651 }
 0x536   :  { %v1653_v28 = vsel %vm405_vm10, %v1650_v47, %v1652_v48  ;;  %v1654_v57 = vsel %vm405_vm10, %v1652_v48, %v1650_v47  ;;  %v1774_v42 = vsel %vm303_vm4, %v1771_v39, 0 }
 0x537   :  { %v1656_v33 = vmul.f32 %v1653_v28, %v3997_v17  ;;  %3392 = vmatmul.mubr.msk.bf16.vlgmr.msra.gmra.mrb[4].mxu0 %vm299_vm5, %v4031_v51  ;;  %3393 = vmatprep.subr.msk.bf16.mxu0 %vm303_vm4, %v1544_v16  ;;  %v1603_v27 = vsel %vm303_vm4, %v1543_v46, 0  ;;  %v1655_v60 = vmul.f32 %v1654_v57, %v4038_v56  ;;  %v1709_v62 = vpop.permute.xlu1 %1708 }
 0x538   :  { %1609 = vmatpush1.bf16.msra.mxu0 %v1603_v27  ;;  %1640 = vmatprep.mubr.bf16.mxu0 %v3674_v7 }
 0x539   :  { %v1658_v59 = vpack.c.bf16 %v1656_v33, %v1656_v33  ;;  %v1711_v23 = vpop.permute.xlu0 %1710  ;;  %v1657_v4 = vpack.c.bf16 %v1655_v60, %v1655_v60 }
 0x53a   :  { %v1712_v63 = vsel %vm479_vm2, %v1709_v62, %v1711_v23  ;;  %v1713_v12 = vsel %vm479_vm2, %v1711_v23, %v1709_v62 }
 0x53b   :  { %3395 = vmatprep.subr.msk.bf16.mxu0 %vm303_vm4, %v1658_v59  ;;  %v1715_v6 = vmul.f32 %v1712_v63, %v3854_v37  ;;  %v1660_v44 = vsel %vm303_vm4, %v1657_v4, 0  ;;  %v1714_v19 = vmul.f32 %v1713_v12, %v3851_v35  ;;  %v1823_v34 = vpop.permute.xlu1 %1822 }
 0x53d   :  { %v1717_v11 = vpack.c.bf16 %v1715_v6, %v1715_v6  ;;  %v1716_v14 = vpack.c.bf16 %v1714_v19, %v1714_v19  ;;  %v1825_v32 = vpop.permute.xlu0 %1824 }
 0x53e   :  { %v1827_v36 = vsel %vm622_vm3, %v1825_v32, %v1823_v34  ;;  %v1826_v43 = vsel %vm622_vm3, %v1823_v34, %v1825_v32 }
 0x53f   :  { %v1719_v18 = vsel %vm303_vm4, %v1716_v14, 0  ;;  %v1829_v38 = vmul.f32 %v1827_v36, %v3867_v45  ;;  %v1828_v16 = vmul.f32 %v1826_v43, %v3882_v58  ;;  %v1882_v47 = vpop.permute.xlu1 %1881 }
 0x541   :  { %v1831_v40 = vpack.c.bf16 %v1829_v38, %v1829_v38  ;;  %v1884_v46 = vpop.permute.xlu0 %1883  ;;  %v1830_v28 = vpack.c.bf16 %v1828_v16, %v1828_v16 }
 0x542   :  { %v1886_v48 = vsel %vm696_vm6, %v1884_v46, %v1882_v47  ;;  %v1885_v59 = vsel %vm696_vm6, %v1882_v47, %v1884_v46 }
 0x543   :  { %3394 = vmatmul.mubr.msk.bf16.vlgmr.msra.gmra.mrb[4].mxu0 %vm299_vm5, %v4057_v1  ;;  %v1888_v33 = vmul.f32 %v1886_v48, %v3916_v9  ;;  %v1833_v57 = vsel %vm303_vm4, %v1830_v28, 0  ;;  %v1887_v60 = vmul.f32 %v1885_v59, %v3913_v8  ;;  %v1941_v62 = vpop.permute.xlu1 %1940 }
 0x544   :  { %1666 = vmatpush1.bf16.msra.mxu0 %v1660_v44  ;;  %1697 = vmatprep.mubr.bf16.mxu0 %v3674_v7 }
 0x545   :  { %3397 = vmatprep.subr.msk.bf16.mxu0 %vm303_vm4, %v1717_v11  ;;  %v1890_v27 = vpack.c.bf16 %v1888_v33, %v1888_v33  ;;  %v1943_v23 = vpop.permute.xlu0 %1942  ;;  %v1889_v4 = vpack.c.bf16 %v1887_v60, %v1887_v60 }
 0x546   :  { %v1945_v63 = vsel %vm770_vm9, %v1943_v23, %v1941_v62  ;;  %v1944_v12 = vsel %vm770_vm9, %v1941_v62, %v1943_v23 }
 0x547   :  { %v1947_v6 = vmul.f32 %v1945_v63, %v3966_v54  ;;  %v1892_v44 = vsel %vm303_vm4, %v1889_v4, 0  ;;  %v1946_v13 = vmul.f32 %v1944_v12, %v3963_v53  ;;  %v2000_v14 = vpop.permute.xlu1 %1999 }
 0x549   :  { %v1949_v11 = vpack.c.bf16 %v1947_v6, %v1947_v6  ;;  %v2002_v19 = vpop.permute.xlu0 %2001  ;;  %v2083_v6 = vstv %s3411_s13 }
 0x54a   :  { %v2004_v15 = vsel %vm844_vm11, %v2002_v19, %v2000_v14  ;;  %v2003_v36 = vsel %vm844_vm11, %v2000_v14, %v2002_v19 }
 0x54b   :  { %v2005_v38 = vmul.f32 %v2003_v36, %v4004_v20 }
 0x54d   :  { %v2007_v39 = vpack.c.bf16 %v2005_v38, %v2005_v38  ;;  %v2093_v38 = vstv %s3412_s1 }
 0x54f   :  { %3396 = vmatmul.mubr.msk.bf16.vlgmr.msra.gmra.mrb[4].mxu0 %vm299_vm5, %v4069_v5 }
 0x550   :  { %1725 = vmatpush1.bf16.msra.mxu0 %v1719_v18  ;;  %1756 = vmatprep.mubr.bf16.mxu0 %v3674_v7  ;;  %v1948_v18 = vpack.c.bf16 %v1946_v13, %v1946_v13 }
 0x551   :  { %3399 = vmatprep.subr.msk.bf16.mxu0 %vm303_vm4, %v1772_v25  ;;  %v2006_v25 = vmul.f32 %v2004_v15, %v4007_v22 }
 0x552   :  { %v1951_v34 = vsel %vm303_vm4, %v1948_v18, 0 }
 0x553   :  { %v2008_v32 = vpack.c.bf16 %v2006_v25, %v2006_v25 }
 0x558   :  { %v2065_v47 = vpop.permute.xlu1 %2064 }
 0x55b   :  { %3398 = vmatmul.mubr.msk.bf16.vlgmr.msra.gmra.mrb[4].mxu0 %vm299_vm5, %v3876_v55 }
 0x55c   :  { %1780 = vmatpush1.bf16.msra.mxu0 %v1774_v42  ;;  %1811 = vmatprep.mubr.bf16.mxu0 %v3674_v7 }
 0x55d   :  { %3401 = vmatprep.subr.msk.bf16.mxu0 %vm303_vm4, %v1831_v40  ;;  %v2010_v40 = vsel %vm303_vm4, %v2007_v39, 0 }
 0x567   :  { %3400 = vmatmul.mubr.msk.bf16.vlgmr.msra.gmra.mrb[4].mxu0 %vm299_vm5, %v3894_v0 }
 0x568   :  { %1839 = vmatpush1.bf16.msra.mxu0 %v1833_v57  ;;  %1870 = vmatprep.mubr.bf16.mxu0 %v3674_v7 }
 0x569   :  { %3403 = vmatprep.subr.msk.bf16.mxu0 %vm303_vm4, %v1890_v27 }
 0x573   :  { %3402 = vmatmul.mubr.msk.bf16.vlgmr.msra.gmra.mrb[4].mxu0 %vm299_vm5, %v3903_v3 }
 0x574   :  { %1898 = vmatpush1.bf16.msra.mxu0 %v1892_v44  ;;  %1929 = vmatprep.mubr.bf16.mxu0 %v3674_v7 }
 0x575   :  { %3405 = vmatprep.subr.msk.bf16.mxu0 %vm303_vm4, %v1949_v11  ;;  %v2095_v11 = vstv %s3413_s14 }
 0x57f   :  { %3404 = vmatmul.mubr.msk.bf16.vlgmr.msra.gmra.mrb[4].mxu0 %vm299_vm5, %v3955_v49 }
 0x580   :  { %1957 = vmatpush1.bf16.msra.mxu0 %v1951_v34  ;;  %1988 = vmatprep.mubr.bf16.mxu0 %v3674_v7  ;;  %v2091_v34 = vstv %s3410_s15 }
 0x581   :  { %3407 = vmatprep.subr.msk.bf16.mxu0 %vm303_vm4, %v2008_v32 }
 0x58b   :  { %3406 = vmatmul.mubr.msk.bf16.vlgmr.msra.gmra.mrb[4].mxu0 %vm299_vm5, %v4017_v24 }
 0x58c   :  { %2016 = vmatpush1.bf16.msra.mxu0 %v2010_v40  ;;  %2047 = vmatprep.mubr.bf16.mxu0 %v3674_v7 }
 0x597   :  { %3408 = vmatmul.mubr.msk.bf16.vlgmr.msra.gmra.mrb[4].mxu0 %vm299_vm5, %v4052_v61 }
 0x598   :  { %2735 = vmatprep.mubr.bf16.mxu0 %v3674_v7 }
 0x66a   :  { %v2049_v42 = vpop.f32.mrb[4].mxu0 }
 0x66b   :  { %v2060_v43 = vmul.f32 %v2049_v42, %v4079_v50  ;;  %v2069_v46 = vmul.f32 %v2049_v42, %v4081_v52  ;;  %v2051_v16 = vpop.f32.mrb[5].mxu0 }
 0x66c   :  { %v2061_v48 = vmul.f32 %v2051_v16, %v4079_v50  ;;  %v2070_v28 = vmul.f32 %v2051_v16, %v4081_v52  ;;  %v2053_v33 = vpop.f32.mrb[6].mxu0 }
 0x66d   :  { %v2067_v27 = vadd.f32 %v2065_v47, %v2060_v43  ;;  %v2071_v57 = vadd.f32 %v2069_v46, %v2065_v47  ;;  %v2054_v59 = vpop.f32.mrb[7].mxu0 }
 0x66e   :  { %v2068_v23 = vadd.f32 %v2065_v47, %v2061_v48  ;;  %v2072_v60 = vadd.f32 %v2070_v28, %v2065_v47 }
 0x66f   :  { %v2073_v62 = vsub.f32 %v2071_v57, %v2067_v27 }
 0x670   :  { %v2074_v63 = vsub.f32 %v2072_v60, %v2068_v23 }
 0x671   :  { %v2075_v4 = vmul.f32 %v2073_v62, %v4087_v2 }
 0x672   :  { %v2076_v44 = vmul.f32 %v2074_v63, %v4087_v2 }
 0x673   :  { %v2077_v12 = vadd.f32 %v2075_v4, %v2067_v27 }
 0x674   :  { %v2078_v19 = vadd.f32 %v2076_v44, %v2068_v23 }
 0x675   :  { %v2084_v13 = vmul.f32 %v2083_v6, %v2077_v12  ;;  %v2096_v14 = vmul.f32 %v2095_v11, %v2077_v12 }
 0x676   :  { %v2085_v15 = vmul.f32 %v2083_v6, %v2078_v19  ;;  %v2097_v18 = vmul.f32 %v2095_v11, %v2078_v19 }
 0x678   :  { %v2088_v25 = vcombine.low %v2084_v13, %v2085_v15  ;;  %v2100_v32 = vcombine.low %v2096_v14, %v2097_v18 }
 0x67a   :  { %v2090_v36 = vsub.f32 %v4225_v10, %v2088_v25  ;;  %v3432_v10 = vld [vmem:[%s4642_s7 + $0xc] sm:$0xf] }
 0x67c   :  { %v2092_v39 = vmul.f32 %v2091_v34, %v2090_v36 }
 0x67e   :  { %v2094_v40 = vmul.f32 %v2093_v38, %v2092_v39 }
 0x680   :  { %v4358_v42 = vadd.f32 %v2100_v32, %v2094_v40 }
 0x682   :  { %2116 = vrot.lane.b32.xlu0 %v4358_v42, %s3677_s10  ;;  %v2104_v43 = vcombine.high %v4358_v42, %v4358_v42 }
 0x684   :  { %2118 = vrot.lane.b32.xlu1 %v2104_v43, %s3677_s10 }
 0x686   :  { %2106 = vrot.lane.b32.xlu0 %v4358_v42, %s3681_s27 }
 0x688   :  { %2108 = vrot.lane.b32.xlu1 %v2104_v43, %s3681_s27 }
 0x68a   :  { %2220 = vrot.lane.b32.xlu0 %v4358_v42, %s3683_s29 }
 0x68c   :  { %2222 = vrot.lane.b32.xlu1 %v2104_v43, %s3683_s29 }
 0x68e   :  { %2279 = vrot.lane.b32.xlu0 %v4358_v42, %s3675_s2 }
 0x690   :  { %2281 = vrot.lane.b32.xlu1 %v2104_v43, %s3675_s2 }
 0x692   :  { %2393 = vrot.lane.b32.xlu0 %v4358_v42, %s3676_s3 }
 0x694   :  { %2395 = vrot.lane.b32.xlu1 %v2104_v43, %s3676_s3 }
 0x696   :  { %2452 = vrot.lane.b32.xlu0 %v4358_v42, %s3679_s26 }
 0x698   :  { %2454 = vrot.lane.b32.xlu1 %v2104_v43, %s3679_s26 }
 0x69a   :  { %2511 = vrot.lane.b32.xlu0 %v4358_v42, %s3682_s28 }
 0x69c   :  { %2513 = vrot.lane.b32.xlu1 %v2104_v43, %s3682_s28 }
 0x69e   :  { %2570 = vrot.lane.b32.xlu0 %v4358_v42, %s3684_s30 }
 0x6a0   :  { %2572 = vrot.lane.b32.xlu1 %v2104_v43, %s3684_s30 }
 0x6a2   :  { %2635 = vperm.xlu0 %3656, %v3432_v10  }
 0x6f4   :  { %v2117_v46 = vpop.permute.xlu0 %2116 }
 0x6f6   :  { %v2119_v16 = vpop.permute.xlu1 %2118 }
 0x6f7   :  { %v2120_v47 = vsel %vm281_vm7, %v2117_v46, %v2119_v16  ;;  %v2121_v48 = vsel %vm281_vm7, %v2119_v16, %v2117_v46 }
 0x6f8   :  { %v2122_v28 = vmul.f32 %v2121_v48, %v3932_v21  ;;  %v2123_v33 = vmul.f32 %v2120_v47, %v3938_v26  ;;  %v2107_v27 = vpop.permute.xlu0 %2106  ;;  %v2338_v47 = vmul.f32 %v4358_v42, %v3836_v29 }
 0x6fa   :  { %v2124_v57 = vpack.c.bf16 %v2122_v28, %v2122_v28  ;;  %v2125_v59 = vpack.c.bf16 %v2123_v33, %v2123_v33  ;;  %v2109_v23 = vpop.permute.xlu1 %2108  ;;  %v2340_v28 = vcombine.high %v2338_v47, %v2338_v47 }
 0x6fb   :  { %v2110_v60 = vsel %vm259_vm8, %v2107_v27, %v2109_v23  ;;  %v2111_v62 = vsel %vm259_vm8, %v2109_v23, %v2107_v27 }
 0x6fc   :  { %v2112_v63 = vmul.f32 %v2111_v62, %v3971_v30  ;;  %v2113_v4 = vmul.f32 %v2110_v60, %v3946_v41  ;;  %3414 = vmatprep.subr.msk.bf16.mxu1 %vm303_vm4, %v2125_v59  ;;  %v2127_v6 = vsel %vm303_vm4, %v2124_v57, 0  ;;  %v2221_v12 = vpop.permute.xlu0 %2220  ;;  %v2343_v27 = vpack.c.bf16 %v2340_v28, %v2340_v28 }
 0x6fd   :  { %2133 = vmatpush1.bf16.msra.mxu1 %v2127_v6  ;;  %v2342_v62 = vpack.c.bf16 %v2338_v47, %v2338_v47 }
 0x6fe   :  { %v2114_v11 = vpack.c.bf16 %v2112_v63, %v2112_v63  ;;  %v2115_v44 = vpack.c.bf16 %v2113_v4, %v2113_v4  ;;  %v2223_v19 = vpop.permute.xlu1 %2222 }
 0x6ff   :  { %v2224_v13 = vsel %vm405_vm10, %v2221_v12, %v2223_v19  ;;  %v2225_v18 = vsel %vm405_vm10, %v2223_v19, %v2221_v12  ;;  %v2345_v4 = vsel %vm303_vm4, %v2342_v62, 0 }
 0x700   :  { %v2227_v14 = vmul.f32 %v2224_v13, %v3997_v17  ;;  %3415 = vmatmul.mubr.msk.bf16.vlgmr.msra.gmra.mrb[16].mxu1 %vm299_vm5, %v4031_v51  ;;  %3416 = vmatprep.subr.msk.bf16.mxu1 %vm303_vm4, %v2115_v44  ;;  %v2174_v15 = vsel %vm303_vm4, %v2114_v11, 0  ;;  %v2226_v34 = vmul.f32 %v2225_v18, %v4038_v56  ;;  %v2280_v36 = vpop.permute.xlu0 %2279 }
 0x701   :  { %2180 = vmatpush1.bf16.msra.mxu1 %v2174_v15  ;;  %2211 = vmatprep.mubr.bf16.mxu1 %v3674_v7 }
 0x702   :  { %v2229_v25 = vpack.c.bf16 %v2227_v14, %v2227_v14  ;;  %v2282_v32 = vpop.permute.xlu1 %2281  ;;  %v2228_v39 = vpack.c.bf16 %v2226_v34, %v2226_v34 }
 0x703   :  { %v2283_v38 = vsel %vm479_vm2, %v2280_v36, %v2282_v32  ;;  %v2284_v46 = vsel %vm479_vm2, %v2282_v32, %v2280_v36 }
 0x704   :  { %3418 = vmatprep.subr.msk.bf16.mxu1 %vm303_vm4, %v2229_v25  ;;  %v2286_v40 = vmul.f32 %v2283_v38, %v3854_v37  ;;  %v2231_v10 = vsel %vm303_vm4, %v2228_v39, 0  ;;  %v2285_v16 = vmul.f32 %v2284_v46, %v3851_v35  ;;  %v2394_v59 = vpop.permute.xlu0 %2393 }
 0x706   :  { %v2288_v43 = vpack.c.bf16 %v2286_v40, %v2286_v40  ;;  %v2287_v48 = vpack.c.bf16 %v2285_v16, %v2285_v16  ;;  %v2396_v57 = vpop.permute.xlu1 %2395 }
 0x707   :  { %v2398_v23 = vsel %vm622_vm3, %v2396_v57, %v2394_v59  ;;  %v2397_v6 = vsel %vm622_vm3, %v2394_v59, %v2396_v57 }
 0x708   :  { %v2290_v33 = vsel %vm303_vm4, %v2287_v48, 0  ;;  %v2400_v60 = vmul.f32 %v2398_v23, %v3867_v45  ;;  %v2399_v44 = vmul.f32 %v2397_v6, %v3882_v58  ;;  %v2453_v12 = vpop.permute.xlu0 %2452 }
 0x70a   :  { %v2402_v63 = vpack.c.bf16 %v2400_v60, %v2400_v60  ;;  %v2455_v11 = vpop.permute.xlu1 %2454  ;;  %v2401_v13 = vpack.c.bf16 %v2399_v44, %v2399_v44 }
 0x70b   :  { %v2457_v19 = vsel %vm696_vm6, %v2455_v11, %v2453_v12  ;;  %v2456_v25 = vsel %vm696_vm6, %v2453_v12, %v2455_v11 }
 0x70c   :  { %3417 = vmatmul.mubr.msk.bf16.vlgmr.msra.gmra.mrb[16].mxu1 %vm299_vm5, %v4057_v1  ;;  %v2459_v14 = vmul.f32 %v2457_v19, %v3916_v9  ;;  %v2404_v18 = vsel %vm303_vm4, %v2401_v13, 0  ;;  %v2458_v34 = vmul.f32 %v2456_v25, %v3913_v8  ;;  %v2512_v36 = vpop.permute.xlu0 %2511 }
 0x70d   :  { %2237 = vmatpush1.bf16.msra.mxu1 %v2231_v10  ;;  %2268 = vmatprep.mubr.bf16.mxu1 %v3674_v7 }
 0x70e   :  { %3420 = vmatprep.subr.msk.bf16.mxu1 %vm303_vm4, %v2288_v43  ;;  %v2461_v15 = vpack.c.bf16 %v2459_v14, %v2459_v14  ;;  %v2514_v32 = vpop.permute.xlu1 %2513  ;;  %v2460_v39 = vpack.c.bf16 %v2458_v34, %v2458_v34 }
 0x70f   :  { %v2516_v38 = vsel %vm770_vm9, %v2514_v32, %v2512_v36  ;;  %v2515_v46 = vsel %vm770_vm9, %v2512_v36, %v2514_v32 }
 0x710   :  { %v2518_v40 = vmul.f32 %v2516_v38, %v3966_v54  ;;  %v2463_v10 = vsel %vm303_vm4, %v2460_v39, 0  ;;  %v2517_v47 = vmul.f32 %v2515_v46, %v3963_v53  ;;  %v2571_v48 = vpop.permute.xlu0 %2570 }
 0x712   :  { %v2520_v43 = vpack.c.bf16 %v2518_v40, %v2518_v40  ;;  %v2573_v16 = vpop.permute.xlu1 %2572  ;;  %v2654_v40 = vstv %s3434_s17 }
 0x713   :  { %v2575_v28 = vsel %vm844_vm11, %v2573_v16, %v2571_v48  ;;  %v2574_v23 = vsel %vm844_vm11, %v2571_v48, %v2573_v16 }
 0x714   :  { %v2576_v60 = vmul.f32 %v2574_v23, %v4004_v20 }
 0x716   :  { %v2578_v62 = vpack.c.bf16 %v2576_v60, %v2576_v60  ;;  %v2664_v60 = vstv %s3435_s4 }
 0x718   :  { %3419 = vmatmul.mubr.msk.bf16.vlgmr.msra.gmra.mrb[16].mxu1 %vm299_vm5, %v4069_v5 }
 0x719   :  { %2296 = vmatpush1.bf16.msra.mxu1 %v2290_v33  ;;  %2327 = vmatprep.mubr.bf16.mxu1 %v3674_v7  ;;  %v2519_v33 = vpack.c.bf16 %v2517_v47, %v2517_v47 }
 0x71a   :  { %3422 = vmatprep.subr.msk.bf16.mxu1 %vm303_vm4, %v2343_v27  ;;  %v2577_v27 = vmul.f32 %v2575_v28, %v4007_v22 }
 0x71b   :  { %v2522_v59 = vsel %vm303_vm4, %v2519_v33, 0 }
 0x71c   :  { %v2579_v57 = vpack.c.bf16 %v2577_v27, %v2577_v27 }
 0x721   :  { %v2636_v12 = vpop.permute.xlu0 %2635 }
 0x724   :  { %3421 = vmatmul.mubr.msk.bf16.vlgmr.msra.gmra.mrb[16].mxu1 %vm299_vm5, %v3876_v55 }
 0x725   :  { %2351 = vmatpush1.bf16.msra.mxu1 %v2345_v4  ;;  %2382 = vmatprep.mubr.bf16.mxu1 %v3674_v7 }
 0x726   :  { %3424 = vmatprep.subr.msk.bf16.mxu1 %vm303_vm4, %v2402_v63  ;;  %v2581_v63 = vsel %vm303_vm4, %v2578_v62, 0 }
 0x730   :  { %3423 = vmatmul.mubr.msk.bf16.vlgmr.msra.gmra.mrb[16].mxu1 %vm299_vm5, %v3894_v0 }
 0x731   :  { %2410 = vmatpush1.bf16.msra.mxu1 %v2404_v18  ;;  %2441 = vmatprep.mubr.bf16.mxu1 %v3674_v7 }
 0x732   :  { %3426 = vmatprep.subr.msk.bf16.mxu1 %vm303_vm4, %v2461_v15 }
 0x73c   :  { %3425 = vmatmul.mubr.msk.bf16.vlgmr.msra.gmra.mrb[16].mxu1 %vm299_vm5, %v3903_v3 }
 0x73d   :  { %2469 = vmatpush1.bf16.msra.mxu1 %v2463_v10  ;;  %2500 = vmatprep.mubr.bf16.mxu1 %v3674_v7 }
 0x73e   :  { %3428 = vmatprep.subr.msk.bf16.mxu1 %vm303_vm4, %v2520_v43  ;;  %v2666_v43 = vstv %s3436_s18 }
 0x748   :  { %3427 = vmatmul.mubr.msk.bf16.vlgmr.msra.gmra.mrb[16].mxu1 %vm299_vm5, %v3955_v49 }
 0x749   :  { %2528 = vmatpush1.bf16.msra.mxu1 %v2522_v59  ;;  %2559 = vmatprep.mubr.bf16.mxu1 %v3674_v7  ;;  %v2662_v59 = vstv %s3433_s19 }
 0x74a   :  { %3430 = vmatprep.subr.msk.bf16.mxu1 %vm303_vm4, %v2579_v57 }
 0x754   :  { %3429 = vmatmul.mubr.msk.bf16.vlgmr.msra.gmra.mrb[16].mxu1 %vm299_vm5, %v4017_v24 }
 0x755   :  { %2587 = vmatpush1.bf16.msra.mxu1 %v2581_v63  ;;  %2618 = vmatprep.mubr.bf16.mxu1 %v3674_v7 }
 0x760   :  { %3431 = vmatmul.mubr.msk.bf16.vlgmr.msra.gmra.mrb[16].mxu1 %vm299_vm5, %v4052_v61 }
 0x761   :  { %3300 = vmatprep.mubr.bf16.mxu1 %v3674_v7 }
 0x833   :  { %v2620_v4 = vpop.f32.mrb[16].mxu1 }
 0x834   :  { %v2631_v6 = vmul.f32 %v2620_v4, %v4079_v50  ;;  %v2640_v11 = vmul.f32 %v2620_v4, %v4081_v52  ;;  %v2622_v44 = vpop.f32.mrb[17].mxu1 }
 0x835   :  { %v2632_v19 = vmul.f32 %v2622_v44, %v4079_v50  ;;  %v2641_v13 = vmul.f32 %v2622_v44, %v4081_v52  ;;  %v2624_v14 = vpop.f32.mrb[18].mxu1 }
 0x836   :  { %v2638_v15 = vadd.f32 %v2636_v12, %v2631_v6  ;;  %v2642_v18 = vadd.f32 %v2640_v11, %v2636_v12  ;;  %v2625_v25 = vpop.f32.mrb[19].mxu1  ;;  %v3253_v11 = vld [vmem:[%s4644_s9] sm:$0x7]  ;;  %s3459_s9 = sld [smem:[#allocation2 + $0x203]] }
 0x837   :  { %v2639_v32 = vadd.f32 %v2636_v12, %v2632_v19  ;;  %v2643_v34 = vadd.f32 %v2641_v13, %v2636_v12 }
 0x838   :  { %v2644_v36 = vsub.f32 %v2642_v18, %v2638_v15 }
 0x839   :  { %v2645_v38 = vsub.f32 %v2643_v34, %v2639_v32 }
 0x83a   :  { %v2646_v39 = vmul.f32 %v2644_v36, %v4087_v2 }
 0x83b   :  { %v2647_v10 = vmul.f32 %v2645_v38, %v4087_v2 }
 0x83c   :  { %v2648_v46 = vadd.f32 %v2646_v39, %v2638_v15 }
 0x83d   :  { %v2649_v16 = vadd.f32 %v2647_v10, %v2639_v32 }
 0x83e   :  { %v2655_v47 = vmul.f32 %v2654_v40, %v2648_v46  ;;  %v2667_v48 = vmul.f32 %v2666_v43, %v2648_v46 }
 0x83f   :  { %v2656_v28 = vmul.f32 %v2654_v40, %v2649_v16  ;;  %v2668_v33 = vmul.f32 %v2666_v43, %v2649_v16 }
 0x841   :  { %v2659_v27 = vcombine.low %v2655_v47, %v2656_v28  ;;  %v2671_v57 = vcombine.low %v2667_v48, %v2668_v33 }
 0x843   :  { %v2661_v23 = vsub.f32 %v4358_v42, %v2659_v27  ;;  %v3455_v42 = vld [vmem:[%s4642_s7 + $0x10] sm:$0xf]  ;;  %s3457_s7 = sld [smem:[#allocation2 + $0x201]] }
 0x845   :  { %v2663_v62 = vmul.f32 %v2662_v59, %v2661_v23 }
 0x847   :  { %v2665_v63 = vmul.f32 %v2664_v60, %v2663_v62 }
 0x849   :  { %v4491_v4 = vadd.f32 %v2671_v57, %v2665_v63 }
 0x84b   :  { %2687 = vrot.lane.b32.xlu1 %v4491_v4, %s3677_s10  ;;  %v2675_v6 = vcombine.high %v4491_v4, %v4491_v4  ;;  %v2909_v62 = vmul.f32 %v4491_v4, %v3836_v29 }
 0x84d   :  { %2689 = vrot.lane.b32.xlu0 %v2675_v6, %s3677_s10  ;;  %v2911_v63 = vcombine.high %v2909_v62, %v2909_v62 }
 0x84f   :  { %2677 = vrot.lane.b32.xlu1 %v4491_v4, %s3681_s27 }
 0x851   :  { %2679 = vrot.lane.b32.xlu0 %v2675_v6, %s3681_s27 }
 0x853   :  { %2791 = vrot.lane.b32.xlu1 %v4491_v4, %s3683_s29 }
 0x855   :  { %2793 = vrot.lane.b32.xlu0 %v2675_v6, %s3683_s29 }
 0x857   :  { %2850 = vrot.lane.b32.xlu1 %v4491_v4, %s3675_s2 }
 0x859   :  { %2852 = vrot.lane.b32.xlu0 %v2675_v6, %s3675_s2 }
 0x85b   :  { %2964 = vrot.lane.b32.xlu1 %v4491_v4, %s3676_s3 }
 0x85d   :  { %2966 = vrot.lane.b32.xlu0 %v2675_v6, %s3676_s3 }
 0x85f   :  { %3023 = vrot.lane.b32.xlu1 %v4491_v4, %s3679_s26 }
 0x861   :  { %3025 = vrot.lane.b32.xlu0 %v2675_v6, %s3679_s26  ;;  %s3456_s26 = sld [smem:[#allocation2 + $0x200]] }
 0x863   :  { %3082 = vrot.lane.b32.xlu1 %v4491_v4, %s3682_s28 }
 0x865   :  { %3084 = vrot.lane.b32.xlu0 %v2675_v6, %s3682_s28  ;;  %s3458_s28 = sld [smem:[#allocation2 + $0x202]] }
 0x867   :  { %3141 = vrot.lane.b32.xlu1 %v4491_v4, %s3684_s30 }
 0x869   :  { %3143 = vrot.lane.b32.xlu0 %v2675_v6, %s3684_s30  ;;  %v2914_v6 = vpack.c.bf16 %v2911_v63, %v2911_v63 }
 0x86b   :  { %3206 = vperm.xlu1 %3657, %v3455_v42  }
 0x86d   :  { %3256 = vperm.xlu0 %3656, %v3253_v11  }
 0x8bd   :  { %v2688_v44 = vpop.permute.xlu1 %2687 }
 0x8bf   :  { %v2690_v12 = vpop.permute.xlu0 %2689 }
 0x8c0   :  { %v2691_v19 = vsel %vm281_vm7, %v2688_v44, %v2690_v12  ;;  %v2692_v13 = vsel %vm281_vm7, %v2690_v12, %v2688_v44  ;;  %v2913_v44 = vpack.c.bf16 %v2909_v62, %v2909_v62  ;;  %v3237_v62 = vstv %s3459_s9 }
 0x8c1   :  { %v2693_v14 = vmul.f32 %v2692_v13, %v3932_v21  ;;  %v2694_v15 = vmul.f32 %v2691_v19, %v3938_v26  ;;  %v2678_v18 = vpop.permute.xlu1 %2677 }
 0x8c3   :  { %v2695_v25 = vpack.c.bf16 %v2693_v14, %v2693_v14  ;;  %v2696_v32 = vpack.c.bf16 %v2694_v15, %v2694_v15  ;;  %v2680_v34 = vpop.permute.xlu0 %2679 }
 0x8c4   :  { %v2681_v36 = vsel %vm259_vm8, %v2678_v18, %v2680_v34  ;;  %v2682_v38 = vsel %vm259_vm8, %v2680_v34, %v2678_v18 }
 0x8c5   :  { %v2683_v39 = vmul.f32 %v2682_v38, %v3971_v30  ;;  %v2684_v40 = vmul.f32 %v2681_v36, %v3946_v41  ;;  %3437 = vmatprep.subr.msk.bf16.mxu0 %vm303_vm4, %v2696_v32  ;;  %v2698_v21 = vsel %vm303_vm4, %v2695_v25, 0  ;;  %v2792_v10 = vpop.permute.xlu1 %2791 }
 0x8c6   :  { %2704 = vmatpush1.bf16.msra.mxu0 %v2698_v21 }
 0x8c7   :  { %v2685_v26 = vpack.c.bf16 %v2683_v39, %v2683_v39  ;;  %v2686_v43 = vpack.c.bf16 %v2684_v40, %v2684_v40  ;;  %v2794_v46 = vpop.permute.xlu0 %2793 }
 0x8c8   :  { %v2795_v16 = vsel %vm405_vm10, %v2792_v10, %v2794_v46  ;;  %v2796_v30 = vsel %vm405_vm10, %v2794_v46, %v2792_v10 }
 0x8c9   :  { %v2798_v47 = vmul.f32 %v2795_v16, %v3997_v17  ;;  %3438 = vmatmul.mubr.msk.bf16.vlgmr.msra.gmra.mrb[8].mxu0 %vm299_vm5, %v4031_v51  ;;  %3439 = vmatprep.subr.msk.bf16.mxu0 %vm303_vm4, %v2686_v43  ;;  %v2745_v41 = vsel %vm303_vm4, %v2685_v26, 0  ;;  %v2797_v33 = vmul.f32 %v2796_v30, %v4038_v56  ;;  %v2851_v27 = vpop.permute.xlu1 %2850 }
 0x8ca   :  { %2751 = vmatpush1.bf16.msra.mxu0 %v2745_v41  ;;  %2782 = vmatprep.mubr.bf16.mxu0 %v3674_v7 }
 0x8cb   :  { %v2800_v48 = vpack.c.bf16 %v2798_v47, %v2798_v47  ;;  %v2853_v28 = vpop.permute.xlu0 %2852  ;;  %v2799_v51 = vpack.c.bf16 %v2797_v33, %v2797_v33 }
 0x8cc   :  { %v2854_v17 = vsel %vm479_vm2, %v2851_v27, %v2853_v28  ;;  %v2855_v60 = vsel %vm479_vm2, %v2853_v28, %v2851_v27 }
 0x8cd   :  { %3441 = vmatprep.subr.msk.bf16.mxu0 %vm303_vm4, %v2800_v48  ;;  %v2857_v57 = vmul.f32 %v2854_v17, %v3854_v37  ;;  %v2802_v23 = vsel %vm303_vm4, %v2799_v51, 0  ;;  %v2856_v56 = vmul.f32 %v2855_v60, %v3851_v35  ;;  %v2965_v11 = vpop.permute.xlu1 %2964 }
 0x8cf   :  { %v2859_v59 = vpack.c.bf16 %v2857_v57, %v2857_v57  ;;  %v2858_v37 = vpack.c.bf16 %v2856_v56, %v2856_v56  ;;  %v2967_v42 = vpop.permute.xlu0 %2966  ;;  %v3225_v56 = vstv %s3457_s7 }
 0x8d0   :  { %v2969_v35 = vsel %vm622_vm3, %v2967_v42, %v2965_v11  ;;  %v2968_v19 = vsel %vm622_vm3, %v2965_v11, %v2967_v42 }
 0x8d1   :  { %v2971_v29 = vmul.f32 %v2969_v35, %v3867_v45  ;;  %v2970_v14 = vmul.f32 %v2968_v19, %v3882_v58  ;;  %v3024_v15 = vpop.permute.xlu1 %3023 }
 0x8d3   :  { %v2973_v12 = vpack.c.bf16 %v2971_v29, %v2971_v29  ;;  %v3026_v13 = vpop.permute.xlu0 %3025  ;;  %v2972_v18 = vpack.c.bf16 %v2970_v14, %v2970_v14  ;;  %v3233_v29 = vstv %s3456_s26 }
 0x8d4   :  { %v3028_v45 = vsel %vm696_vm6, %v3026_v13, %v3024_v15  ;;  %v3027_v34 = vsel %vm696_vm6, %v3024_v15, %v3026_v13 }
 0x8d5   :  { %3440 = vmatmul.mubr.msk.bf16.vlgmr.msra.gmra.mrb[8].mxu0 %vm299_vm5, %v4057_v1  ;;  %v2861_v1 = vsel %vm303_vm4, %v2858_v37, 0  ;;  %v2975_v32 = vsel %vm303_vm4, %v2972_v18, 0  ;;  %v3029_v36 = vmul.f32 %v3027_v34, %v3913_v8  ;;  %v3083_v38 = vpop.permute.xlu1 %3082 }
 0x8d6   :  { %2808 = vmatpush1.bf16.msra.mxu0 %v2802_v23  ;;  %2839 = vmatprep.mubr.bf16.mxu0 %v3674_v7 }
 0x8d7   :  { %3443 = vmatprep.subr.msk.bf16.mxu0 %vm303_vm4, %v2859_v59  ;;  %v3085_v58 = vpop.permute.xlu0 %3084  ;;  %v3031_v39 = vpack.c.bf16 %v3029_v36, %v3029_v36 }
 0x8d8   :  { %v3086_v26 = vsel %vm770_vm9, %v3083_v38, %v3085_v58 }
 0x8d9   :  { %v3034_v21 = vsel %vm303_vm4, %v3031_v39, 0  ;;  %v3088_v43 = vmul.f32 %v3086_v26, %v3963_v53  ;;  %v3142_v10 = vpop.permute.xlu1 %3141 }
 0x8db   :  { %v3144_v8 = vpop.permute.xlu0 %3143  ;;  %v3090_v46 = vpack.c.bf16 %v3088_v43, %v3088_v43 }
 0x8dc   :  { %v3145_v41 = vsel %vm844_vm11, %v3142_v10, %v3144_v8 }
 0x8dd   :  { %v3093_v47 = vsel %vm303_vm4, %v3090_v46, 0  ;;  %v3147_v53 = vmul.f32 %v3145_v41, %v4004_v20 }
 0x8df   :  { %v3149_v30 = vpack.c.bf16 %v3147_v53, %v3147_v53 }
 0x8e1   :  { %3442 = vmatmul.mubr.msk.bf16.vlgmr.msra.gmra.mrb[8].mxu0 %vm299_vm5, %v4069_v5  ;;  %v2916_v5 = vsel %vm303_vm4, %v2913_v44, 0 }
 0x8e2   :  { %2867 = vmatpush1.bf16.msra.mxu0 %v2861_v1  ;;  %2898 = vmatprep.mubr.bf16.mxu0 %v3674_v7 }
 0x8e3   :  { %3445 = vmatprep.subr.msk.bf16.mxu0 %vm303_vm4, %v2914_v6 }
 0x8ea   :  { %v3207_v28 = vpop.permute.xlu1 %3206 }
 0x8ed   :  { %3444 = vmatmul.mubr.msk.bf16.vlgmr.msra.gmra.mrb[8].mxu0 %vm299_vm5, %v3876_v55  ;;  %v3030_v55 = vmul.f32 %v3028_v45, %v3916_v9  ;;  %v3087_v9 = vsel %vm770_vm9, %v3085_v58, %v3083_v38 }
 0x8ee   :  { %2922 = vmatpush1.bf16.msra.mxu0 %v2916_v5  ;;  %2953 = vmatprep.mubr.bf16.mxu0 %v3674_v7 }
 0x8ef   :  { %3447 = vmatprep.subr.msk.bf16.mxu0 %vm303_vm4, %v2973_v12  ;;  %v3032_v25 = vpack.c.bf16 %v3030_v55, %v3030_v55  ;;  %v3235_v12 = vstv %s3458_s28 }
 0x8f9   :  { %3446 = vmatmul.mubr.msk.bf16.vlgmr.msra.gmra.mrb[8].mxu0 %vm299_vm5, %v3894_v0  ;;  %v3089_v0 = vmul.f32 %v3087_v9, %v3966_v54  ;;  %v3146_v54 = vsel %vm844_vm11, %v3144_v8, %v3142_v10 }
 0x8fa   :  { %2981 = vmatpush1.bf16.msra.mxu0 %v2975_v32  ;;  %3012 = vmatprep.mubr.bf16.mxu0 %v3674_v7 }
 0x8fb   :  { %3449 = vmatprep.subr.msk.bf16.mxu0 %vm303_vm4, %v3032_v25  ;;  %v3091_v40 = vpack.c.bf16 %v3089_v0, %v3089_v0 }
 0x905   :  { %3448 = vmatmul.mubr.msk.bf16.vlgmr.msra.gmra.mrb[8].mxu0 %vm299_vm5, %v3903_v3  ;;  %v3148_v3 = vmul.f32 %v3146_v54, %v4007_v22  ;;  %v3152_v22 = vsel %vm303_vm4, %v3149_v30, 0 }
 0x906   :  { %3040 = vmatpush1.bf16.msra.mxu0 %v3034_v21  ;;  %3071 = vmatprep.mubr.bf16.mxu0 %v3674_v7 }
 0x907   :  { %3451 = vmatprep.subr.msk.bf16.mxu0 %vm303_vm4, %v3091_v40  ;;  %v3150_v16 = vpack.c.bf16 %v3148_v3, %v3148_v3 }
 0x911   :  { %3450 = vmatmul.mubr.msk.bf16.vlgmr.msra.gmra.mrb[8].mxu0 %vm299_vm5, %v3955_v49 }
 0x912   :  { %3099 = vmatpush1.bf16.msra.mxu0 %v3093_v47  ;;  %3130 = vmatprep.mubr.bf16.mxu0 %v3674_v7 }
 0x913   :  { %3453 = vmatprep.subr.msk.bf16.mxu0 %vm303_vm4, %v3150_v16 }
 0x91d   :  { %3452 = vmatmul.mubr.msk.bf16.vlgmr.msra.gmra.mrb[8].mxu0 %vm299_vm5, %v4017_v24 }
 0x91e   :  { %3158 = vmatpush1.bf16.msra.mxu0 %v3152_v22  ;;  %3189 = vmatprep.mubr.bf16.mxu0 %v3674_v7 }
 0x929   :  { %3454 = vmatmul.mubr.msk.bf16.vlgmr.msra.gmra.mrb[8].mxu0 %vm299_vm5, %v4052_v61 }
 0x9fc   :  { %v3191_v31 = vpop.f32.mrb[8].mxu0 }
 0x9fd   :  { %v3202_v49 = vmul.f32 %v3191_v31, %v4079_v50  ;;  %v3211_v48 = vmul.f32 %v3191_v31, %v4081_v52  ;;  %v3193_v20 = vpop.f32.mrb[9].mxu0 }
 0x9fe   :  { %v3203_v33 = vmul.f32 %v3193_v20, %v4079_v50  ;;  %v3212_v24 = vmul.f32 %v3193_v20, %v4081_v52  ;;  %v3195_v27 = vpop.f32.mrb[10].mxu0 }
 0x9ff   :  { %v3209_v17 = vadd.f32 %v3207_v28, %v3202_v49  ;;  %v3213_v51 = vadd.f32 %v3211_v48, %v3207_v28  ;;  %v3196_v7 = vpop.f32.mrb[11].mxu0 }
 0xa00   :  { %v3210_v57 = vadd.f32 %v3207_v28, %v3203_v33  ;;  %v3214_v59 = vadd.f32 %v3212_v24, %v3207_v28 }
 0xa01   :  { %v3215_v61 = vsub.f32 %v3213_v51, %v3209_v17 }
 0xa02   :  { %v3216_v23 = vsub.f32 %v3214_v59, %v3210_v57 }
 0xa03   :  { %v3217_v60 = vmul.f32 %v3215_v61, %v4087_v2 }
 0xa04   :  { %v3218_v37 = vmul.f32 %v3216_v23, %v4087_v2  ;;  %v3246_v2 = vld [vmem:[%s4643_s8] sm:$0x7] }
 0xa05   :  { %v3219_v63 = vadd.f32 %v3217_v60, %v3209_v17  ;;  %v3247_v25 = vpack.c.bf16 %v3246_v2, %v3246_v2 }
 0xa06   :  { %v3220_v50 = vadd.f32 %v3218_v37, %v3210_v57 }
 0xa07   :  { %v3226_v1 = vmul.f32 %v3225_v56, %v3219_v63  ;;  %v3238_v52 = vmul.f32 %v3237_v62, %v3219_v63 }
 0xa08   :  { %v3227_v6 = vmul.f32 %v3225_v56, %v3220_v50  ;;  %v3239_v42 = vmul.f32 %v3237_v62, %v3220_v50 }
 0xa0a   :  { %v3230_v11 = vcombine.low %v3226_v1, %v3227_v6  ;;  %v3242_v35 = vcombine.low %v3238_v52, %v3239_v42 }
 0xa0c   :  { %v3232_v44 = vsub.f32 %v4491_v4, %v3230_v11  ;;  %v3257_v4 = vpop.permute.xlu0 %3256 }
 0xa0e   :  { %v3234_v5 = vmul.f32 %v3233_v29, %v3232_v44 }
 0xa10   :  { %v3236_v19 = vmul.f32 %v3235_v12, %v3234_v5 }
 0xa12   :  { %v3244_v13 = vadd.f32 %v3242_v35, %v3236_v19 }
 0xa14   :  { %v3245_v14 = vmul.f32 5.4899807, %v3244_v13 }
 0xa16   :  { %v3249_v15 = vcombine.high %v3245_v14, %v3245_v14  ;;  %v3251_v45 = vpack.c.bf16 %v3245_v14, %v3245_v14 }
 0xa18   :  { %v3252_v18 = vpack.c.bf16 %v3249_v15, %v3249_v15  ;;  %v3263_v55 = vsel %vm303_vm4, %v3251_v45, 0 }
 0xa1a   :  { %3460 = vmatprep.subr.msk.bf16.mxu1 %vm303_vm4, %v3252_v18 }
 0xa1b   :  { %3269 = vmatpush1.bf16.msra.mxu1 %v3263_v55 }
 0xa1e   :  { %3461 = vmatmul.mubr.msk.bf16.vlgmr.msra.gmra.mrb[20].mxu1 %vm299_vm5, %v3247_v25 }
 0xaf1   :  { %v3302_v32 = vpop.f32.mrb[20].mxu1 }
 0xaf2   :  { %v3303_v34 = vadd.f32 %v3302_v32, %v3257_v4  ;;  %v3304_v58 = vpop.f32.mrb[21].mxu1 }
 0xaf3   :  { %v3305_v36 = vadd.f32 %v3304_v58, %v3257_v4  ;;  %v3306_v38 = vpop.f32.mrb[22].mxu1 }
 0xaf4   :  { %v3309_v9 = vmul.f32 0.5, %v3303_v34  ;;  %v3307_v39 = vpop.f32.mrb[23].mxu1 }
 0xaf5   :  { %v3310_v0 = vmul.f32 0.5, %v3305_v36 }
 0xaf6   :  { %v3311_v40 = vadd.f32 0.5, %v3309_v9 }
 0xaf7   :  { %v3312_v21 = vadd.f32 0.5, %v3310_v0 }
 0xaf8   :  { %v3313_v26 = vmax.f32 %v3311_v40, 0.0 }
 0xaf9   :  { %v3314_v8 = vmax.f32 %v3312_v21, 0.0 }
 0xafa   :  { %v3315_v43 = vmin.f32 %v3313_v26, 1.0 }
 0xafb   :  { %v3316_v10 = vmin.f32 %v3314_v8, 1.0 }
 0xafd   :  { %v3319_v54 = vcombine.low %v3315_v43, %v3316_v10 }
 0xaff   :  { %3321 = vst [vmem:[%s4646_s11] sm:$0x77] %v3319_v54 }
 0xb00   :  { %3326 = vsyncpa [#allocation3], 1 }

</bundles_post_ra>
